<compile_context>
chip_gen: v5e
topology: v5e:2x2
jax: 0.10.0
libtpu: 0.0.40
codegen_flags: <defaults>
</compile_context>

<pallas_src>
import jax
import jax.numpy as jnp
from jax.experimental import pallas as pl
from jax.experimental.pallas import tpu as pltpu

LANES = 128                      # lane-dense padding target for feature axes
TM = 256                         # max row tile (fits scoped VMEM on v5e/v6e/v7x)
_VMEM_LIMIT = 32 * 1024 * 1024


def _round_up(x, m):
    return (x + m - 1) // m * m


def _row_tile(m):
    """Row tile: full 256-row tiles for large M, 16-row aligned for tiny M."""
    tm = min(TM, _round_up(m, 16))
    return tm, _round_up(m, tm)


def _compiler_params():
    return pltpu.CompilerParams(dimension_semantics=("parallel",),
                                vmem_limit_bytes=_VMEM_LIMIT)


# ---------------- Pallas kernels ----------------

def _conv_relu_pool_kernel(c00, c01, c10, c11, w_ref, b_ref, o_ref):
    """Fused conv + bias + ReLU + 2x2 max-pool.

    Each c?? ref holds the im2col slab for one corner of every 2x2 pooling
    window.  max over the four conv results == max-pool of the conv output,
    and relu(max(y) + b) == maxpool(relu(y + b)) because bias/relu are
    monotone and the bias is shared by the four corners.
    """
    w = w_ref[...]
    y = jnp.dot(c00[...], w, preferred_element_type=jnp.float32)
    y = jnp.maximum(y, jnp.dot(c01[...], w, preferred_element_type=jnp.float32))
    y = jnp.maximum(y, jnp.dot(c10[...], w, preferred_element_type=jnp.float32))
    y = jnp.maximum(y, jnp.dot(c11[...], w, preferred_element_type=jnp.float32))
    o_ref[...] = jnp.maximum(y + b_ref[...], 0.0).astype(o_ref.dtype)


def _fc_stack_kernel(x_ref, w1, b1, w2, b2, w3, b3, o_ref):
    """fc1+relu -> fc2+relu -> fc3, fused; intermediates stay in VMEM."""
    h = jnp.dot(x_ref[...], w1[...], preferred_element_type=jnp.float32) + b1[...]
    h = jnp.maximum(h, 0.0).astype(jnp.bfloat16)
    h = jnp.dot(h, w2[...], preferred_element_type=jnp.float32) + b2[...]
    h = jnp.maximum(h, 0.0).astype(jnp.bfloat16)
    o_ref[...] = jnp.dot(h, w3[...], preferred_element_type=jnp.float32) + b3[...]


# ---------------- layer wrappers ----------------

def conv_relu_pool(x_nhwc, w_mat, b_vec, *, kh, kw, out_c):
    """Conv2d(k=5, valid) + bias + ReLU + MaxPool2d(2,2) as one pallas_call."""
    N, H, W, C = x_nhwc.shape
    Hp, Wp = (H - kh + 1) // 2, (W - kw + 1) // 2
    K, Kp = kh * kw * C, w_mat.shape[0]

    # Build one K-dense im2col slab per pooling-window corner (XLA glue).
    # TODO(synk): form these patches inside the kernel with manual DMA to
    # avoid materializing the kh*kw-times-larger slabs in HBM.
    slabs = []
    for di in (0, 1):
        for dj in (0, 1):
            taps = [x_nhwc[:, di + ki: di + ki + 2 * Hp: 2,
                           dj + kj: dj + kj + 2 * Wp: 2, :]
                    for ki in range(kh) for kj in range(kw)]
            s = jnp.stack(taps, axis=3).reshape(N * Hp * Wp, K)
            slabs.append(s)

    M = N * Hp * Wp
    tm, Mp = _row_tile(M)
    slabs = [jnp.pad(s, ((0, Mp - M), (0, Kp - K))).astype(jnp.bfloat16)
             for s in slabs]

    x_spec = pl.BlockSpec((tm, Kp), lambda i: (i, 0))
    w_spec = pl.BlockSpec((Kp, LANES), lambda i: (0, 0))
    b_spec = pl.BlockSpec((1, LANES), lambda i: (0, 0))
    o_spec = pl.BlockSpec((tm, LANES), lambda i: (i, 0))

    flops = 2 * 4 * Mp * Kp * LANES
    bytes_accessed = 4 * Mp * Kp * 2 + Kp * LANES * 2 + Mp * LANES * 2
    out = pl.pallas_call(
        _conv_relu_pool_kernel,
        out_shape=jax.ShapeDtypeStruct((Mp, LANES), jnp.bfloat16),
        grid=(Mp // tm,),
        in_specs=[x_spec, x_spec, x_spec, x_spec, w_spec, b_spec],
        out_specs=o_spec,
        compiler_params=_compiler_params(),
        cost_estimate=pl.CostEstimate(flops=flops, transcendentals=0,
                                      bytes_accessed=bytes_accessed),
    )(*slabs, w_mat, b_vec)
    return out[:M, :out_c].reshape(N, Hp, Wp, out_c)


def fc_stack(x_flat, w1, b1, w2, b2, w3, b3, *, out_dim):
    """All three fully-connected layers in one pallas_call, tiled over rows."""
    M, K = x_flat.shape
    Kp = w1.shape[0]
    tm, Mp = _row_tile(M)
    x = jnp.pad(x_flat, ((0, Mp - M), (0, Kp - K))).astype(jnp.bfloat16)

    flops = 2 * Mp * LANES * (Kp + LANES + LANES)
    bytes_accessed = Mp * Kp * 2 + (Kp + 2 * LANES) * LANES * 2 + Mp * LANES * 4
    out = pl.pallas_call(
        _fc_stack_kernel,
        out_shape=jax.ShapeDtypeStruct((Mp, LANES), jnp.float32),
        grid=(Mp // tm,),
        in_specs=[pl.BlockSpec((tm, Kp), lambda i: (i, 0)),
                  pl.BlockSpec((Kp, LANES), lambda i: (0, 0)),
                  pl.BlockSpec((1, LANES), lambda i: (0, 0)),
                  pl.BlockSpec((LANES, LANES), lambda i: (0, 0)),
                  pl.BlockSpec((1, LANES), lambda i: (0, 0)),
                  pl.BlockSpec((LANES, LANES), lambda i: (0, 0)),
                  pl.BlockSpec((1, LANES), lambda i: (0, 0))],
        out_specs=pl.BlockSpec((tm, LANES), lambda i: (i, 0)),
        compiler_params=_compiler_params(),
        cost_estimate=pl.CostEstimate(flops=flops, transcendentals=0,
                                      bytes_accessed=bytes_accessed),
    )(x, w1, b1, w2, b2, w3, b3)
    return out[:M, :out_dim]


# ---------------- parameters ----------------

def init_params(key):
    """PyTorch-default-style uniform(-1/sqrt(fan_in), +1/sqrt(fan_in)) init."""
    ks = jax.random.split(key, 10)

    def u(k, shape, fan_in):
        bound = 1.0 / float(fan_in) ** 0.5
        return jax.random.uniform(k, shape, jnp.float32, -bound, bound)

    return {
        "conv1_w": u(ks[0], (6, 3, 5, 5), 3 * 25),
        "conv1_b": u(ks[1], (6,), 3 * 25),
        "conv2_w": u(ks[2], (16, 6, 5, 5), 6 * 25),
        "conv2_b": u(ks[3], (16,), 6 * 25),
        "fc1_w":   u(ks[4], (120, 400), 400),
        "fc1_b":   u(ks[5], (120,), 400),
        "fc2_w":   u(ks[6], (84, 120), 120),
        "fc2_b":   u(ks[7], (84,), 120),
        "fc3_w":   u(ks[8], (10, 84), 84),
        "fc3_b":   u(ks[9], (10,), 84),
    }


def pack_params(raw):
    """Hoist ALL weight re-layout out of forward(): transpose, zero-pad K to a
    multiple of 128 and output channels to 128 lanes, cast matmul weights to
    bf16 (bias stays f32, accumulation is f32 inside the kernels).  fc1's rows
    are additionally permuted from PyTorch NCHW-flatten order (c,h,w) to
    NHWC-flatten order (h,w,c) so forward() never transposes activations."""

    def pack_conv(w_oihw, b):
        out_c, in_c, kh, kw = w_oihw.shape
        k = kh * kw * in_c
        kp = _round_up(k, LANES)
        w_mat = jnp.transpose(w_oihw, (2, 3, 1, 0)).reshape(k, out_c)
        w_mat = jnp.pad(w_mat, ((0, kp - k), (0, LANES - out_c))).astype(jnp.bfloat16)
        b_vec = jnp.pad(b, (0, LANES - out_c)).reshape(1, LANES).astype(jnp.float32)
        return w_mat, b_vec

    def pack_fc(w_oi, b, chw_to_hwc=None):
        out_d, in_d = w_oi.shape
        kp = _round_up(in_d, LANES)
        w_t = w_oi.T                                    # (in_d, out_d)
        if chw_to_hwc is not None:                      # reorder input features
            c, h, w = chw_to_hwc
            w_t = w_t.reshape(c, h, w, out_d).transpose(1, 2, 0, 3).reshape(in_d, out_d)
        w_mat = jnp.pad(w_t, ((0, kp - in_d), (0, LANES - out_d))).astype(jnp.bfloat16)
        b_vec = jnp.pad(b, (0, LANES - out_d)).reshape(1, LANES).astype(jnp.float32)
        return w_mat, b_vec

    c1w, c1b = pack_conv(raw["conv1_w"], raw["conv1_b"])
    c2w, c2b = pack_conv(raw["conv2_w"], raw["conv2_b"])
    f1w, f1b = pack_fc(raw["fc1_w"], raw["fc1_b"], chw_to_hwc=(16, 5, 5))
    f2w, f2b = pack_fc(raw["fc2_w"], raw["fc2_b"])
    f3w, f3b = pack_fc(raw["fc3_w"], raw["fc3_b"])
    return {"conv1_w": c1w, "conv1_b": c1b,
            "conv2_w": c2w, "conv2_b": c2b,
            "fc1_w": f1w, "fc1_b": f1b,
            "fc2_w": f2w, "fc2_b": f2b,
            "fc3_w": f3w, "fc3_b": f3b}


# ---------------- forward ----------------

def forward(params, x_nchw):
    # PyTorch NCHW input -> NHWC for the conv/pool path.
    x = jnp.transpose(x_nchw, (0, 2, 3, 1)).astype(jnp.float32)
    x = conv_relu_pool(x, params["conv1_w"], params["conv1_b"],
                       kh=5, kw=5, out_c=6)                      # (N,14,14,6)
    x = conv_relu_pool(x, params["conv2_w"], params["conv2_b"],
                       kh=5, kw=5, out_c=16)                     # (N, 5, 5,16)
    n = x.shape[0]
    # NHWC flatten; fc1's weights were pre-permuted to match PyTorch's
    # view(-1, 16*5*5) NCHW-flatten semantics, so no activation transpose here.
    x = x.reshape(n, 5 * 5 * 16)
    return fc_stack(x, params["fc1_w"], params["fc1_b"],
                    params["fc2_w"], params["fc2_b"],
                    params["fc3_w"], params["fc3_b"], out_dim=10)  # (N, 10)


if __name__ == "__main__":
    key = jax.random.PRNGKey(0)
    pkey, xkey = jax.random.split(key)
    params = pack_params(init_params(pkey))
    # The architecture (16*5*5 after two conv5+pool2 stages) implies 3x32x32 input.
    x = jax.random.normal(xkey, (2, 3, 32, 32), jnp.float32)
    out = jax.jit(forward)(params, x)
    out = jax.block_until_ready(out)
    assert out.shape == (2, 10) and out.dtype == jnp.float32
    print("KERNEL_OK")
</pallas_src>

<mosaic_0001>
module attributes {stable_mosaic.version = 11 : i64} {
  func.func @_conv_relu_pool_kernel(%arg0: i32, %arg1: memref<256x128xbf16, #tpu.memory_space<vmem>>, %arg2: memref<256x128xbf16, #tpu.memory_space<vmem>>, %arg3: memref<256x128xbf16, #tpu.memory_space<vmem>>, %arg4: memref<256x128xbf16, #tpu.memory_space<vmem>>, %arg5: memref<128x128xbf16, #tpu.memory_space<vmem>>, %arg6: memref<1x128xf32, #tpu.memory_space<vmem>>, %arg7: memref<256x128xbf16, #tpu.memory_space<vmem>>) attributes {dimension_semantics = [#tpu.dimension_semantics<parallel>], iteration_bounds = array<i64: 2>, scalar_prefetch = 0 : i64, scratch_operands = 0 : i64, tpu.core_type = #tpu.core_type<tc>, window_params = [{transform_indices = @transform_0, window_bounds = array<i64: 256, 128>}, {transform_indices = @transform_1, window_bounds = array<i64: 256, 128>}, {transform_indices = @transform_2, window_bounds = array<i64: 256, 128>}, {transform_indices = @transform_3, window_bounds = array<i64: 256, 128>}, {pipeline_mode = #tpu.pipeline_mode<synchronous>, transform_indices = @transform_4, window_bounds = array<i64: 128, 128>}, {pipeline_mode = #tpu.pipeline_mode<synchronous>, transform_indices = @transform_5, window_bounds = array<i64: 1, 128>}, {transform_indices = @transform_6, window_bounds = array<i64: 256, 128>}]} {
    %c0 = arith.constant 0 : index
    %c0_0 = arith.constant 0 : index
    %0 = vector.load %arg5[%c0, %c0_0] : memref<128x128xbf16, #tpu.memory_space<vmem>>, vector<128x128xbf16>
    %c0_1 = arith.constant 0 : index
    %c0_2 = arith.constant 0 : index
    %1 = vector.load %arg1[%c0_1, %c0_2] : memref<256x128xbf16, #tpu.memory_space<vmem>>, vector<256x128xbf16>
    %cst = arith.constant dense<0.000000e+00> : vector<256x128xf32>
    %2 = tpu.matmul %1, %0, %cst {dimension_numbers = #tpu.dot_dimension_numbers<[1], [0], [0], [1], [0, 0, 1, 1], [], []>} : vector<256x128xbf16>, vector<128x128xbf16>, vector<256x128xf32> -> vector<256x128xf32>
    %c0_3 = arith.constant 0 : index
    %c0_4 = arith.constant 0 : index
    %3 = vector.load %arg2[%c0_3, %c0_4] : memref<256x128xbf16, #tpu.memory_space<vmem>>, vector<256x128xbf16>
    %cst_5 = arith.constant dense<0.000000e+00> : vector<256x128xf32>
    %4 = tpu.matmul %3, %0, %cst_5 {dimension_numbers = #tpu.dot_dimension_numbers<[1], [0], [0], [1], [0, 0, 1, 1], [], []>} : vector<256x128xbf16>, vector<128x128xbf16>, vector<256x128xf32> -> vector<256x128xf32>
    %5 = arith.maximumf %2, %4 : vector<256x128xf32>
    %c0_6 = arith.constant 0 : index
    %c0_7 = arith.constant 0 : index
    %6 = vector.load %arg3[%c0_6, %c0_7] : memref<256x128xbf16, #tpu.memory_space<vmem>>, vector<256x128xbf16>
    %cst_8 = arith.constant dense<0.000000e+00> : vector<256x128xf32>
    %7 = tpu.matmul %6, %0, %cst_8 {dimension_numbers = #tpu.dot_dimension_numbers<[1], [0], [0], [1], [0, 0, 1, 1], [], []>} : vector<256x128xbf16>, vector<128x128xbf16>, vector<256x128xf32> -> vector<256x128xf32>
    %8 = arith.maximumf %5, %7 : vector<256x128xf32>
    %c0_9 = arith.constant 0 : index
    %c0_10 = arith.constant 0 : index
    %9 = vector.load %arg4[%c0_9, %c0_10] : memref<256x128xbf16, #tpu.memory_space<vmem>>, vector<256x128xbf16>
    %cst_11 = arith.constant dense<0.000000e+00> : vector<256x128xf32>
    %10 = tpu.matmul %9, %0, %cst_11 {dimension_numbers = #tpu.dot_dimension_numbers<[1], [0], [0], [1], [0, 0, 1, 1], [], []>} : vector<256x128xbf16>, vector<128x128xbf16>, vector<256x128xf32> -> vector<256x128xf32>
    %11 = arith.maximumf %8, %10 : vector<256x128xf32>
    %c0_12 = arith.constant 0 : index
    %c0_13 = arith.constant 0 : index
    %12 = vector.load %arg6[%c0_12, %c0_13] : memref<1x128xf32, #tpu.memory_space<vmem>>, vector<1x128xf32>
    %13 = vector.broadcast %12 : vector<1x128xf32> to vector<256x128xf32>
    %14 = arith.addf %11, %13 : vector<256x128xf32>
    %cst_14 = arith.constant 0.000000e+00 : f32
    %15 = vector.broadcast %cst_14 : f32 to vector<256x128xf32>
    %16 = arith.maximumf %14, %15 : vector<256x128xf32>
    %17 = arith.truncf %16 : vector<256x128xf32> to vector<256x128xbf16>
    %c0_15 = arith.constant 0 : index
    %c0_16 = arith.constant 0 : index
    %18 = vector.load %arg7[%c0_15, %c0_16] : memref<256x128xbf16, #tpu.memory_space<vmem>>, vector<256x128xbf16>
    tpu.vector_store %arg7[%c0_15, %c0_16], %17 {strides = array<i32>} : memref<256x128xbf16, #tpu.memory_space<vmem>>, vector<256x128xbf16>,
    return
  }
  func.func @transform_0(%arg0: i32) -> (i32, i32) {
    %c0_i32 = arith.constant 0 : i32
    %c0_i32_0 = arith.constant 0 : i32
    return %arg0, %c0_i32 : i32, i32
  }
  func.func @transform_1(%arg0: i32) -> (i32, i32) {
    %c0_i32 = arith.constant 0 : i32
    %c0_i32_0 = arith.constant 0 : i32
    return %arg0, %c0_i32 : i32, i32
  }
  func.func @transform_2(%arg0: i32) -> (i32, i32) {
    %c0_i32 = arith.constant 0 : i32
    %c0_i32_0 = arith.constant 0 : i32
    return %arg0, %c0_i32 : i32, i32
  }
  func.func @transform_3(%arg0: i32) -> (i32, i32) {
    %c0_i32 = arith.constant 0 : i32
    %c0_i32_0 = arith.constant 0 : i32
    return %arg0, %c0_i32 : i32, i32
  }
  func.func @transform_4(%arg0: i32) -> (i32, i32) {
    %c0_i32 = arith.constant 0 : i32
    %c0_i32_0 = arith.constant 0 : i32
    %c0_i32_1 = arith.constant 0 : i32
    return %c0_i32, %c0_i32_0 : i32, i32
  }
  func.func @transform_5(%arg0: i32) -> (i32, i32) {
    %c0_i32 = arith.constant 0 : i32
    %c0_i32_0 = arith.constant 0 : i32
    %c0_i32_1 = arith.constant 0 : i32
    return %c0_i32, %c0_i32_0 : i32, i32
  }
  func.func @transform_6(%arg0: i32) -> (i32, i32) {
    %c0_i32 = arith.constant 0 : i32
    %c0_i32_0 = arith.constant 0 : i32
    return %arg0, %c0_i32 : i32, i32
  }
}

module attributes {stable_mosaic.version = 11 : i64} {
  func.func @_conv_relu_pool_kernel(%arg0: i32, %arg1: memref<64x256xbf16, #tpu.memory_space<vmem>>, %arg2: memref<64x256xbf16, #tpu.memory_space<vmem>>, %arg3: memref<64x256xbf16, #tpu.memory_space<vmem>>, %arg4: memref<64x256xbf16, #tpu.memory_space<vmem>>, %arg5: memref<256x128xbf16, #tpu.memory_space<vmem>>, %arg6: memref<1x128xf32, #tpu.memory_space<vmem>>, %arg7: memref<64x128xbf16, #tpu.memory_space<vmem>>) attributes {dimension_semantics = [#tpu.dimension_semantics<parallel>], iteration_bounds = array<i64: 1>, scalar_prefetch = 0 : i64, scratch_operands = 0 : i64, tpu.core_type = #tpu.core_type<tc>, window_params = [{transform_indices = @transform_0, window_bounds = array<i64: 64, 256>}, {transform_indices = @transform_1, window_bounds = array<i64: 64, 256>}, {transform_indices = @transform_2, window_bounds = array<i64: 64, 256>}, {transform_indices = @transform_3, window_bounds = array<i64: 64, 256>}, {pipeline_mode = #tpu.pipeline_mode<synchronous>, transform_indices = @transform_4, window_bounds = array<i64: 256, 128>}, {pipeline_mode = #tpu.pipeline_mode<synchronous>, transform_indices = @transform_5, window_bounds = array<i64: 1, 128>}, {transform_indices = @transform_6, window_bounds = array<i64: 64, 128>}]} {
    %c0 = arith.constant 0 : index
    %c0_0 = arith.constant 0 : index
    %0 = vector.load %arg5[%c0, %c0_0] : memref<256x128xbf16, #tpu.memory_space<vmem>>, vector<256x128xbf16>
    %c0_1 = arith.constant 0 : index
    %c0_2 = arith.constant 0 : index
    %1 = vector.load %arg1[%c0_1, %c0_2] : memref<64x256xbf16, #tpu.memory_space<vmem>>, vector<64x256xbf16>
    %cst = arith.constant dense<0.000000e+00> : vector<64x128xf32>
    %2 = tpu.matmul %1, %0, %cst {dimension_numbers = #tpu.dot_dimension_numbers<[1], [0], [0], [1], [0, 0, 1, 1], [], []>} : vector<64x256xbf16>, vector<256x128xbf16>, vector<64x128xf32> -> vector<64x128xf32>
    %c0_3 = arith.constant 0 : index
    %c0_4 = arith.constant 0 : index
    %3 = vector.load %arg2[%c0_3, %c0_4] : memref<64x256xbf16, #tpu.memory_space<vmem>>, vector<64x256xbf16>
    %cst_5 = arith.constant dense<0.000000e+00> : vector<64x128xf32>
    %4 = tpu.matmul %3, %0, %cst_5 {dimension_numbers = #tpu.dot_dimension_numbers<[1], [0], [0], [1], [0, 0, 1, 1], [], []>} : vector<64x256xbf16>, vector<256x128xbf16>, vector<64x128xf32> -> vector<64x128xf32>
    %5 = arith.maximumf %2, %4 : vector<64x128xf32>
    %c0_6 = arith.constant 0 : index
    %c0_7 = arith.constant 0 : index
    %6 = vector.load %arg3[%c0_6, %c0_7] : memref<64x256xbf16, #tpu.memory_space<vmem>>, vector<64x256xbf16>
    %cst_8 = arith.constant dense<0.000000e+00> : vector<64x128xf32>
    %7 = tpu.matmul %6, %0, %cst_8 {dimension_numbers = #tpu.dot_dimension_numbers<[1], [0], [0], [1], [0, 0, 1, 1], [], []>} : vector<64x256xbf16>, vector<256x128xbf16>, vector<64x128xf32> -> vector<64x128xf32>
    %8 = arith.maximumf %5, %7 : vector<64x128xf32>
    %c0_9 = arith.constant 0 : index
    %c0_10 = arith.constant 0 : index
    %9 = vector.load %arg4[%c0_9, %c0_10] : memref<64x256xbf16, #tpu.memory_space<vmem>>, vector<64x256xbf16>
    %cst_11 = arith.constant dense<0.000000e+00> : vector<64x128xf32>
    %10 = tpu.matmul %9, %0, %cst_11 {dimension_numbers = #tpu.dot_dimension_numbers<[1], [0], [0], [1], [0, 0, 1, 1], [], []>} : vector<64x256xbf16>, vector<256x128xbf16>, vector<64x128xf32> -> vector<64x128xf32>
    %11 = arith.maximumf %8, %10 : vector<64x128xf32>
    %c0_12 = arith.constant 0 : index
    %c0_13 = arith.constant 0 : index
    %12 = vector.load %arg6[%c0_12, %c0_13] : memref<1x128xf32, #tpu.memory_space<vmem>>, vector<1x128xf32>
    %13 = vector.broadcast %12 : vector<1x128xf32> to vector<64x128xf32>
    %14 = arith.addf %11, %13 : vector<64x128xf32>
    %cst_14 = arith.constant 0.000000e+00 : f32
    %15 = vector.broadcast %cst_14 : f32 to vector<64x128xf32>
    %16 = arith.maximumf %14, %15 : vector<64x128xf32>
    %17 = arith.truncf %16 : vector<64x128xf32> to vector<64x128xbf16>
    %c0_15 = arith.constant 0 : index
    %c0_16 = arith.constant 0 : index
    %18 = vector.load %arg7[%c0_15, %c0_16] : memref<64x128xbf16, #tpu.memory_space<vmem>>, vector<64x128xbf16>
    tpu.vector_store %arg7[%c0_15, %c0_16], %17 {strides = array<i32>} : memref<64x128xbf16, #tpu.memory_space<vmem>>, vector<64x128xbf16>,
    return
  }
  func.func @transform_0(%arg0: i32) -> (i32, i32) {
    %c0_i32 = arith.constant 0 : i32
    %c0_i32_0 = arith.constant 0 : i32
    return %arg0, %c0_i32 : i32, i32
  }
  func.func @transform_1(%arg0: i32) -> (i32, i32) {
    %c0_i32 = arith.constant 0 : i32
    %c0_i32_0 = arith.constant 0 : i32
    return %arg0, %c0_i32 : i32, i32
  }
  func.func @transform_2(%arg0: i32) -> (i32, i32) {
    %c0_i32 = arith.constant 0 : i32
    %c0_i32_0 = arith.constant 0 : i32
    return %arg0, %c0_i32 : i32, i32
  }
  func.func @transform_3(%arg0: i32) -> (i32, i32) {
    %c0_i32 = arith.constant 0 : i32
    %c0_i32_0 = arith.constant 0 : i32
    return %arg0, %c0_i32 : i32, i32
  }
  func.func @transform_4(%arg0: i32) -> (i32, i32) {
    %c0_i32 = arith.constant 0 : i32
    %c0_i32_0 = arith.constant 0 : i32
    %c0_i32_1 = arith.constant 0 : i32
    return %c0_i32, %c0_i32_0 : i32, i32
  }
  func.func @transform_5(%arg0: i32) -> (i32, i32) {
    %c0_i32 = arith.constant 0 : i32
    %c0_i32_0 = arith.constant 0 : i32
    %c0_i32_1 = arith.constant 0 : i32
    return %c0_i32, %c0_i32_0 : i32, i32
  }
  func.func @transform_6(%arg0: i32) -> (i32, i32) {
    %c0_i32 = arith.constant 0 : i32
    %c0_i32_0 = arith.constant 0 : i32
    return %arg0, %c0_i32 : i32, i32
  }
}

module attributes {stable_mosaic.version = 11 : i64} {
  func.func @_fc_stack_kernel(%arg0: i32, %arg1: memref<16x512xbf16, #tpu.memory_space<vmem>>, %arg2: memref<512x128xbf16, #tpu.memory_space<vmem>>, %arg3: memref<1x128xf32, #tpu.memory_space<vmem>>, %arg4: memref<128x128xbf16, #tpu.memory_space<vmem>>, %arg5: memref<1x128xf32, #tpu.memory_space<vmem>>, %arg6: memref<128x128xbf16, #tpu.memory_space<vmem>>, %arg7: memref<1x128xf32, #tpu.memory_space<vmem>>, %arg8: memref<16x128xf32, #tpu.memory_space<vmem>>) attributes {dimension_semantics = [#tpu.dimension_semantics<parallel>], iteration_bounds = array<i64: 1>, scalar_prefetch = 0 : i64, scratch_operands = 0 : i64, tpu.core_type = #tpu.core_type<tc>, window_params = [{transform_indices = @transform_0, window_bounds = array<i64: 16, 512>}, {pipeline_mode = #tpu.pipeline_mode<synchronous>, transform_indices = @transform_1, window_bounds = array<i64: 512, 128>}, {pipeline_mode = #tpu.pipeline_mode<synchronous>, transform_indices = @transform_2, window_bounds = array<i64: 1, 128>}, {pipeline_mode = #tpu.pipeline_mode<synchronous>, transform_indices = @transform_3, window_bounds = array<i64: 128, 128>}, {pipeline_mode = #tpu.pipeline_mode<synchronous>, transform_indices = @transform_4, window_bounds = array<i64: 1, 128>}, {pipeline_mode = #tpu.pipeline_mode<synchronous>, transform_indices = @transform_5, window_bounds = array<i64: 128, 128>}, {pipeline_mode = #tpu.pipeline_mode<synchronous>, transform_indices = @transform_6, window_bounds = array<i64: 1, 128>}, {transform_indices = @transform_7, window_bounds = array<i64: 16, 128>}]} {
    %c0 = arith.constant 0 : index
    %c0_0 = arith.constant 0 : index
    %0 = vector.load %arg1[%c0, %c0_0] : memref<16x512xbf16, #tpu.memory_space<vmem>>, vector<16x512xbf16>
    %c0_1 = arith.constant 0 : index
    %c0_2 = arith.constant 0 : index
    %1 = vector.load %arg2[%c0_1, %c0_2] : memref<512x128xbf16, #tpu.memory_space<vmem>>, vector<512x128xbf16>
    %cst = arith.constant dense<0.000000e+00> : vector<16x128xf32>
    %2 = tpu.matmul %0, %1, %cst {dimension_numbers = #tpu.dot_dimension_numbers<[1], [0], [0], [1], [0, 0, 1, 1], [], []>} : vector<16x512xbf16>, vector<512x128xbf16>, vector<16x128xf32> -> vector<16x128xf32>
    %c0_3 = arith.constant 0 : index
    %c0_4 = arith.constant 0 : index
    %3 = vector.load %arg3[%c0_3, %c0_4] : memref<1x128xf32, #tpu.memory_space<vmem>>, vector<1x128xf32>
    %4 = vector.broadcast %3 : vector<1x128xf32> to vector<16x128xf32>
    %5 = arith.addf %2, %4 : vector<16x128xf32>
    %cst_5 = arith.constant 0.000000e+00 : f32
    %6 = vector.broadcast %cst_5 : f32 to vector<16x128xf32>
    %7 = arith.maximumf %5, %6 : vector<16x128xf32>
    %8 = arith.truncf %7 : vector<16x128xf32> to vector<16x128xbf16>
    %c0_6 = arith.constant 0 : index
    %c0_7 = arith.constant 0 : index
    %9 = vector.load %arg4[%c0_6, %c0_7] : memref<128x128xbf16, #tpu.memory_space<vmem>>, vector<128x128xbf16>
    %cst_8 = arith.constant dense<0.000000e+00> : vector<16x128xf32>
    %10 = tpu.matmul %8, %9, %cst_8 {dimension_numbers = #tpu.dot_dimension_numbers<[1], [0], [0], [1], [0, 0, 1, 1], [], []>} : vector<16x128xbf16>, vector<128x128xbf16>, vector<16x128xf32> -> vector<16x128xf32>
    %c0_9 = arith.constant 0 : index
    %c0_10 = arith.constant 0 : index
    %11 = vector.load %arg5[%c0_9, %c0_10] : memref<1x128xf32, #tpu.memory_space<vmem>>, vector<1x128xf32>
    %12 = vector.broadcast %11 : vector<1x128xf32> to vector<16x128xf32>
    %13 = arith.addf %10, %12 : vector<16x128xf32>
    %cst_11 = arith.constant 0.000000e+00 : f32
    %14 = vector.broadcast %cst_11 : f32 to vector<16x128xf32>
    %15 = arith.maximumf %13, %14 : vector<16x128xf32>
    %16 = arith.truncf %15 : vector<16x128xf32> to vector<16x128xbf16>
    %c0_12 = arith.constant 0 : index
    %c0_13 = arith.constant 0 : index
    %17 = vector.load %arg6[%c0_12, %c0_13] : memref<128x128xbf16, #tpu.memory_space<vmem>>, vector<128x128xbf16>
    %cst_14 = arith.constant dense<0.000000e+00> : vector<16x128xf32>
    %18 = tpu.matmul %16, %17, %cst_14 {dimension_numbers = #tpu.dot_dimension_numbers<[1], [0], [0], [1], [0, 0, 1, 1], [], []>} : vector<16x128xbf16>, vector<128x128xbf16>, vector<16x128xf32> -> vector<16x128xf32>
    %c0_15 = arith.constant 0 : index
    %c0_16 = arith.constant 0 : index
    %19 = vector.load %arg7[%c0_15, %c0_16] : memref<1x128xf32, #tpu.memory_space<vmem>>, vector<1x128xf32>
    %20 = vector.broadcast %19 : vector<1x128xf32> to vector<16x128xf32>
    %21 = arith.addf %18, %20 : vector<16x128xf32>
    %c0_17 = arith.constant 0 : index
    %c0_18 = arith.constant 0 : index
    %22 = vector.load %arg8[%c0_17, %c0_18] : memref<16x128xf32, #tpu.memory_space<vmem>>, vector<16x128xf32>
    tpu.vector_store %arg8[%c0_17, %c0_18], %21 {strides = array<i32>} : memref<16x128xf32, #tpu.memory_space<vmem>>, vector<16x128xf32>,
    return
  }
  func.func @transform_0(%arg0: i32) -> (i32, i32) {
    %c0_i32 = arith.constant 0 : i32
    %c0_i32_0 = arith.constant 0 : i32
    return %arg0, %c0_i32 : i32, i32
  }
  func.func @transform_1(%arg0: i32) -> (i32, i32) {
    %c0_i32 = arith.constant 0 : i32
    %c0_i32_0 = arith.constant 0 : i32
    %c0_i32_1 = arith.constant 0 : i32
    return %c0_i32, %c0_i32_0 : i32, i32
  }
  func.func @transform_2(%arg0: i32) -> (i32, i32) {
    %c0_i32 = arith.constant 0 : i32
    %c0_i32_0 = arith.constant 0 : i32
    %c0_i32_1 = arith.constant 0 : i32
    return %c0_i32, %c0_i32_0 : i32, i32
  }
  func.func @transform_3(%arg0: i32) -> (i32, i32) {
    %c0_i32 = arith.constant 0 : i32
    %c0_i32_0 = arith.constant 0 : i32
    %c0_i32_1 = arith.constant 0 : i32
    return %c0_i32, %c0_i32_0 : i32, i32
  }
  func.func @transform_4(%arg0: i32) -> (i32, i32) {
    %c0_i32 = arith.constant 0 : i32
    %c0_i32_0 = arith.constant 0 : i32
    %c0_i32_1 = arith.constant 0 : i32
    return %c0_i32, %c0_i32_0 : i32, i32
  }
  func.func @transform_5(%arg0: i32) -> (i32, i32) {
    %c0_i32 = arith.constant 0 : i32
    %c0_i32_0 = arith.constant 0 : i32
    %c0_i32_1 = arith.constant 0 : i32
    return %c0_i32, %c0_i32_0 : i32, i32
  }
  func.func @transform_6(%arg0: i32) -> (i32, i32) {
    %c0_i32 = arith.constant 0 : i32
    %c0_i32_0 = arith.constant 0 : i32
    %c0_i32_1 = arith.constant 0 : i32
    return %c0_i32, %c0_i32_0 : i32, i32
  }
  func.func @transform_7(%arg0: i32) -> (i32, i32) {
    %c0_i32 = arith.constant 0 : i32
    %c0_i32_0 = arith.constant 0 : i32
    return %arg0, %c0_i32 : i32, i32
  }
}

</mosaic_0001>

<bundles_post_ra>
// kernel: forward.3
= control target key start
LH: loop header
LB: loop body
LE: loop exit
PB: predicated region body
PF: predicated region fallthrough
CT: control target
= control target key end

     0   :  { %s2097_s21 = smov 0   ;;  %s2281_s0 = inlined_call_operand.vmem [shape: bf16[512,128], index: 0, kind: input, shape index: {}]   ;;  %s2282_s1 = inlined_call_operand.vmem [shape: bf16[512,128], index: 1, kind: input, shape index: {}]   ;;  %s2283_s2 = inlined_call_operand.vmem [shape: bf16[512,128], index: 2, kind: input, shape index: {}]   ;;  %s2284_s3 = inlined_call_operand.vmem [shape: bf16[512,128], index: 3, kind: input, shape index: {}]   ;;  %s2285_s4 = inlined_call_operand.vmem [shape: bf16[128,128], index: 4, kind: input, shape index: {}]   ;;  %s2286_s5 = inlined_call_operand.vmem [shape: f32[1,128], index: 5, kind: input, shape index: {}]   ;;  %s2287_s6 = inlined_call_operand.vmem [shape: bf16[512,128], index: 6, kind: output, shape index: {}]  }
   0x1 LB: > { %s1573_s22 = sadd.s32 4294967295, %s2060_s21   ;;  %p1577_p0 = scmp.ge.s32.totalorder %s2060_s21, 1  ;;  %s2060_s21 = sphi %s2097_s21, %s16_s21  }
   0x2   : > { %p246_p1 = scmp.lt.s32.totalorder %s2060_s21, 3 }
   0x4   : > { %p247_p2 = pnand %p1577_p0, %p246_p1 }
   0x5   : > { %s1578_s7 = sshll.u32 (!%p247_p2), %s1573_s22, 5 }
   0x6   : > { %250 = sbr.rel (%p247_p2) target bundleno = 435 (0x1b3), region = 44  ;;  %p292_p3 = scmp.lt.s32.totalorder (!%p247_p2), %s1578_s7, 63 }
   0xb   : > { %v1885_v0 = vld [vmem:[%s2285_s4 + $0x38] sm:$0xff]  ;;  %v1884_v1 = vld [vmem:[%s2285_s4 + $0x30] sm:$0xff]  ;;  %v1883_v2 = vld [vmem:[%s2285_s4 + $0x28] sm:$0xff]  ;;  %s2289_s7 = smov (!%p292_p3, %s1578_s7), 63 }
   0xc   : > { %513 = vmatpush.bf16.msra.mxu0 %v1885_v0  ;;  %730 = vmatpush.bf16.msra.mxu1 %v1885_v0  ;;  %v1882_v3 = vld [vmem:[%s2285_s4 + $0x20] sm:$0xff]  ;;  %v1881_v4 = vld [vmem:[%s2285_s4 + $0x18] sm:$0xff]  ;;  %v1880_v5 = vld [vmem:[%s2285_s4 + $0x10] sm:$0xff]  ;;  %s2126_s14 = sshll.u32 %s2289_s7, 2 }
   0xd   : > { %979 = vmatpush.bf16.msra.mxu2 %v1885_v0  ;;  %1228 = vmatpush.bf16.msra.mxu3 %v1885_v0  ;;  %v1879_v6 = vld [vmem:[%s2285_s4 + $0x8] sm:$0xff]  ;;  %v1878_v7 = vld [vmem:[%s2285_s4] sm:$0xff]  ;;  %s2135_s19 = scalar_lea.vmem %s2281_s0, %s2126_s14  ;;  %s2141_s23 = scalar_lea.vmem %s2282_s1, %s2126_s14 }
   0xe   : > { %s2147_s26 = scalar_lea.vmem %s2283_s2, %s2126_s14  ;;  %s2153_s29 = scalar_lea.vmem %s2284_s3, %s2126_s14  ;;  %v1886_v8 = vld [vmem:[%s2135_s19] sm:$0xff]  ;;  %v1887_v12 = vld [vmem:[%s2135_s19 + $0x8] sm:$0xff]  ;;  %v1888_v16 = vld [vmem:[%s2135_s19 + $0x10] sm:$0xff] }
   0xf   : > { %v1902_v9 = vld [vmem:[%s2141_s23] sm:$0xff]  ;;  %v1903_v13 = vld [vmem:[%s2141_s23 + $0x8] sm:$0xff]  ;;  %v1904_v17 = vld [vmem:[%s2141_s23 + $0x10] sm:$0xff]  ;;  %s2206_s10 = scalar_lea.vmem %s2287_s6, %s2126_s14 }
  0x10   : > { %514 = vmatpush.bf16.msra.mxu0 %v1884_v1  ;;  %731 = vmatpush.bf16.msra.mxu1 %v1884_v1  ;;  %v1918_v10 = vld [vmem:[%s2147_s26] sm:$0xff]  ;;  %v1919_v14 = vld [vmem:[%s2147_s26 + $0x8] sm:$0xff]  ;;  %v1920_v18 = vld [vmem:[%s2147_s26 + $0x10] sm:$0xff] }
  0x11   : > { %980 = vmatpush.bf16.msra.mxu2 %v1884_v1  ;;  %1229 = vmatpush.bf16.msra.mxu3 %v1884_v1  ;;  %v1934_v11 = vld [vmem:[%s2153_s29] sm:$0xff]  ;;  %v1935_v15 = vld [vmem:[%s2153_s29 + $0x8] sm:$0xff]  ;;  %v1936_v19 = vld [vmem:[%s2153_s29 + $0x10] sm:$0xff] }
  0x12   : > { %v1889_v20 = vld [vmem:[%s2135_s19 + $0x18] sm:$0xff]  ;;  %v1890_v24 = vld [vmem:[%s2135_s19 + $0x20] sm:$0xff]  ;;  %v1891_v28 = vld [vmem:[%s2135_s19 + $0x28] sm:$0xff] }
  0x13   : > { %v1905_v21 = vld [vmem:[%s2141_s23 + $0x18] sm:$0xff]  ;;  %v1906_v25 = vld [vmem:[%s2141_s23 + $0x20] sm:$0xff]  ;;  %v1907_v29 = vld [vmem:[%s2141_s23 + $0x28] sm:$0xff] }
  0x14   : > { %515 = vmatpush.bf16.msra.mxu0 %v1883_v2  ;;  %732 = vmatpush.bf16.msra.mxu1 %v1883_v2  ;;  %v1921_v22 = vld [vmem:[%s2147_s26 + $0x18] sm:$0xff]  ;;  %v1922_v26 = vld [vmem:[%s2147_s26 + $0x20] sm:$0xff]  ;;  %v1923_v30 = vld [vmem:[%s2147_s26 + $0x28] sm:$0xff] }
  0x15   : > { %981 = vmatpush.bf16.msra.mxu2 %v1883_v2  ;;  %1230 = vmatpush.bf16.msra.mxu3 %v1883_v2  ;;  %v1937_v23 = vld [vmem:[%s2153_s29 + $0x18] sm:$0xff]  ;;  %v1938_v27 = vld [vmem:[%s2153_s29 + $0x20] sm:$0xff]  ;;  %v1939_v31 = vld [vmem:[%s2153_s29 + $0x28] sm:$0xff] }
  0x16   : > { %v1892_v32 = vld [vmem:[%s2135_s19 + $0x30] sm:$0xff]  ;;  %v1893_v36 = vld [vmem:[%s2135_s19 + $0x38] sm:$0xff]  ;;  %v1894_v40 = vld [vmem:[%s2135_s19 + $0x40] sm:$0xff] }
  0x17   : > { %v1908_v33 = vld [vmem:[%s2141_s23 + $0x30] sm:$0xff]  ;;  %v1909_v37 = vld [vmem:[%s2141_s23 + $0x38] sm:$0xff]  ;;  %v1910_v41 = vld [vmem:[%s2141_s23 + $0x40] sm:$0xff] }
  0x18   : > { %516 = vmatpush.bf16.msra.mxu0 %v1882_v3  ;;  %733 = vmatpush.bf16.msra.mxu1 %v1882_v3  ;;  %v1924_v34 = vld [vmem:[%s2147_s26 + $0x30] sm:$0xff]  ;;  %v1925_v38 = vld [vmem:[%s2147_s26 + $0x38] sm:$0xff]  ;;  %v1926_v44 = vld [vmem:[%s2147_s26 + $0x40] sm:$0xff] }
  0x19   : > { %982 = vmatpush.bf16.msra.mxu2 %v1882_v3  ;;  %1231 = vmatpush.bf16.msra.mxu3 %v1882_v3  ;;  %v1940_v35 = vld [vmem:[%s2153_s29 + $0x30] sm:$0xff]  ;;  %v1941_v39 = vld [vmem:[%s2153_s29 + $0x38] sm:$0xff]  ;;  %v1942_v45 = vld [vmem:[%s2153_s29 + $0x40] sm:$0xff] }
  0x1a   : > { %v2194_v53 = vld [vmem:[%s2286_s5] ss:$0 sm:$0xff]  ;;  %v1895_v57 = vld [vmem:[%s2135_s19 + $0x48] sm:$0xff] }
  0x1b   : > { %v1911_v58 = vld [vmem:[%s2141_s23 + $0x48] sm:$0xff] }
  0x1c   : > { %517 = vmatpush.bf16.msra.mxu0 %v1881_v4  ;;  %734 = vmatpush.bf16.msra.mxu1 %v1881_v4  ;;  %v1927_v62 = vld [vmem:[%s2147_s26 + $0x48] sm:$0xff] }
  0x1d   : > { %983 = vmatpush.bf16.msra.mxu2 %v1881_v4  ;;  %1232 = vmatpush.bf16.msra.mxu3 %v1881_v4  ;;  %v1943_v63 = vld [vmem:[%s2153_s29 + $0x48] sm:$0xff] }
  0x20   : > { %518 = vmatpush.bf16.msra.mxu0 %v1880_v5  ;;  %735 = vmatpush.bf16.msra.mxu1 %v1880_v5 }
  0x21   : > { %984 = vmatpush.bf16.msra.mxu2 %v1880_v5  ;;  %1233 = vmatpush.bf16.msra.mxu3 %v1880_v5 }
  0x24   : > { %519 = vmatpush.bf16.msra.mxu0 %v1879_v6  ;;  %736 = vmatpush.bf16.msra.mxu1 %v1879_v6 }
  0x25   : > { %985 = vmatpush.bf16.msra.mxu2 %v1879_v6  ;;  %1234 = vmatpush.bf16.msra.mxu3 %v1879_v6 }
  0x28   : > { %520 = vmatpush.bf16.msra.mxu0 %v1878_v7  ;;  %737 = vmatpush.bf16.msra.mxu1 %v1878_v7 }
  0x29   : > { %986 = vmatpush.bf16.msra.mxu2 %v1878_v7  ;;  %1235 = vmatpush.bf16.msra.mxu3 %v1878_v7 }
  0x2b   : > { %521 = vmatmul.bf16.vlgmr.msra.gmra.mxu0 %v1886_v8  ;;  %738 = vmatmul.bf16.vlgmr.msra.gmra.mxu1 %v1902_v9 }
  0x2c   : > { %987 = vmatmul.bf16.vlgmr.msra.gmra.mxu2 %v1918_v10  ;;  %1236 = vmatmul.bf16.vlgmr.msra.gmra.mxu3 %v1934_v11 }
  0x3b   : > { %526 = vmatmul.bf16.gmra.mxu0 %v1887_v12  ;;  %743 = vmatmul.bf16.gmra.mxu1 %v1903_v13 }
  0x3c   : > { %992 = vmatmul.bf16.gmra.mxu2 %v1919_v14  ;;  %1241 = vmatmul.bf16.gmra.mxu3 %v1935_v15 }
  0x4b   : > { %531 = vmatmul.bf16.gmra.mxu0 %v1888_v16  ;;  %748 = vmatmul.bf16.gmra.mxu1 %v1904_v17  ;;  %v1896_v16 = vld [vmem:[%s2135_s19 + $0x50] sm:$0xff] }
  0x4c   : > { %997 = vmatmul.bf16.gmra.mxu2 %v1920_v18  ;;  %1246 = vmatmul.bf16.gmra.mxu3 %v1936_v19  ;;  %v1912_v17 = vld [vmem:[%s2141_s23 + $0x50] sm:$0xff] }
  0x5b   : > { %536 = vmatmul.bf16.gmra.mxu0 %v1889_v20  ;;  %753 = vmatmul.bf16.gmra.mxu1 %v1905_v21  ;;  %v1928_v21 = vld [vmem:[%s2147_s26 + $0x50] sm:$0xff] }
  0x5c   : > { %1002 = vmatmul.bf16.gmra.mxu2 %v1921_v22  ;;  %1251 = vmatmul.bf16.gmra.mxu3 %v1937_v23  ;;  %v1944_v22 = vld [vmem:[%s2153_s29 + $0x50] sm:$0xff] }
  0x6b   : > { %541 = vmatmul.bf16.gmra.mxu0 %v1890_v24  ;;  %758 = vmatmul.bf16.gmra.mxu1 %v1906_v25 }
  0x6c   : > { %1007 = vmatmul.bf16.gmra.mxu2 %v1922_v26  ;;  %1256 = vmatmul.bf16.gmra.mxu3 %v1938_v27 }
  0x7b   : > { %546 = vmatmul.bf16.gmra.mxu0 %v1891_v28  ;;  %763 = vmatmul.bf16.gmra.mxu1 %v1907_v29 }
  0x7c   : > { %1012 = vmatmul.bf16.gmra.mxu2 %v1923_v30  ;;  %1261 = vmatmul.bf16.gmra.mxu3 %v1939_v31 }
  0x8b   : > { %551 = vmatmul.bf16.gmra.mxu0 %v1892_v32  ;;  %768 = vmatmul.bf16.gmra.mxu1 %v1908_v33 }
  0x8c   : > { %1017 = vmatmul.bf16.gmra.mxu2 %v1924_v34  ;;  %1266 = vmatmul.bf16.gmra.mxu3 %v1940_v35 }
  0x9b   : > { %556 = vmatmul.bf16.gmra.mxu0 %v1893_v36  ;;  %773 = vmatmul.bf16.gmra.mxu1 %v1909_v37 }
  0x9c   : > { %1022 = vmatmul.bf16.gmra.mxu2 %v1925_v38  ;;  %1271 = vmatmul.bf16.gmra.mxu3 %v1941_v39  ;;  %v1897_v39 = vld [vmem:[%s2135_s19 + $0x58] sm:$0xff] }
  0xa8   : > { %v522_v42 = vpop.f32.mrf.mxu0  ;;  %v739_v43 = vpop.f32.mrf.mxu1 }
  0xa9   : > { %v819_v46 = vmax.f32 %v522_v42, %v739_v43 }
  0xab   : > { %561 = vmatmul.bf16.gmra.mxu0 %v1894_v40  ;;  %778 = vmatmul.bf16.gmra.mxu1 %v1910_v41  ;;  %v1913_v40 = vld [vmem:[%s2141_s23 + $0x58] sm:$0xff] }
  0xac   : > { %1027 = vmatmul.bf16.gmra.mxu2 %v1926_v44  ;;  %1276 = vmatmul.bf16.gmra.mxu3 %v1942_v45  ;;  %v1929_v44 = vld [vmem:[%s2147_s26 + $0x58] sm:$0xff] }
  0xad   : > { %v1945_v45 = vld [vmem:[%s2153_s29 + $0x58] sm:$0xff] }
  0xaf   : > { %v988_v47 = vpop.f32.mrf.mxu2  ;;  %v1237_v48 = vpop.f32.mrf.mxu3 }
  0xb0   : > { %v524_v49 = vpop.f32.mrf.mxu0  ;;  %v741_v50 = vpop.f32.mrf.mxu1  ;;  %v1068_v51 = vmax.f32 %v819_v46, %v988_v47 }
  0xb1   : > { %v820_v54 = vmax.f32 %v524_v49, %v741_v50 }
  0xb2   : > { %v1317_v52 = vmax.f32 %v1068_v51, %v1237_v48 }
  0xb4   : > { %v1353_v0 = vadd.f32 %v2194_v53, %v1317_v52 }
  0xb6   : > { %v1385_v3 = vmax.f32 %v1353_v0, 0.0  ;;  %v1914_v0 = vld [vmem:[%s2141_s23 + $0x60] sm:$0xff] }
  0xb7   : > { %v990_v55 = vpop.f32.mrf.mxu2  ;;  %v1239_v56 = vpop.f32.mrf.mxu3 }
  0xb8   : > { %v1069_v59 = vmax.f32 %v820_v54, %v990_v55  ;;  %v527_v60 = vpop.f32.mrf.mxu0  ;;  %v744_v61 = vpop.f32.mrf.mxu1 }
  0xb9   : > { %v821_v5 = vmax.f32 %v527_v60, %v744_v61 }
  0xba   : > { %v1318_v1 = vmax.f32 %v1069_v59, %v1239_v56 }
  0xbb   : > { %566 = vmatmul.bf16.gmra.mxu0 %v1895_v57  ;;  %783 = vmatmul.bf16.gmra.mxu1 %v1911_v58 }
  0xbc   : > { %v1354_v2 = vadd.f32 %v2194_v53, %v1318_v1  ;;  %1032 = vmatmul.bf16.gmra.mxu2 %v1927_v62  ;;  %1281 = vmatmul.bf16.gmra.mxu3 %v1943_v63  ;;  %v1898_v63 = vld [vmem:[%s2135_s19 + $0x60] sm:$0xff] }
  0xbe   : > { %v1386_v4 = vmax.f32 %v1354_v2, 0.0 }
  0xbf   : > { %v993_v6 = vpop.f32.mrf.mxu2  ;;  %v1242_v7 = vpop.f32.mrf.mxu3 }
  0xc0   : > { %v1953_v8 = vpack.c.bf16 %v1386_v4, %v1385_v3  ;;  %v529_v9 = vpop.f32.mrf.mxu0  ;;  %v746_v10 = vpop.f32.mrf.mxu1  ;;  %v1070_v11 = vmax.f32 %v821_v5, %v993_v6  ;;  %v1930_v4 = vld [vmem:[%s2147_s26 + $0x60] sm:$0xff] }
  0xc1   : > { %v822_v13 = vmax.f32 %v529_v9, %v746_v10  ;;  %v1946_v5 = vld [vmem:[%s2153_s29 + $0x60] sm:$0xff] }
  0xc2   : > { %1954 = vst [vmem:[%s2206_s10] sm:$0xff] %v1953_v8   ;;  %v1319_v12 = vmax.f32 %v1070_v11, %v1242_v7 }
  0xc4   : > { %v1355_v23 = vadd.f32 %v2194_v53, %v1319_v12 }
  0xc6   : > { %v1387_v26 = vmax.f32 %v1355_v23, 0.0  ;;  %v1915_v23 = vld [vmem:[%s2141_s23 + $0x68] sm:$0xff] }
  0xc7   : > { %v995_v14 = vpop.f32.mrf.mxu2  ;;  %v1244_v15 = vpop.f32.mrf.mxu3 }
  0xc8   : > { %v1071_v18 = vmax.f32 %v822_v13, %v995_v14  ;;  %v532_v19 = vpop.f32.mrf.mxu0  ;;  %v749_v20 = vpop.f32.mrf.mxu1 }
  0xc9   : > { %v823_v28 = vmax.f32 %v532_v19, %v749_v20 }
  0xca   : > { %v1320_v24 = vmax.f32 %v1071_v18, %v1244_v15 }
  0xcb   : > { %571 = vmatmul.bf16.gmra.mxu0 %v1896_v16  ;;  %788 = vmatmul.bf16.gmra.mxu1 %v1912_v17 }
  0xcc   : > { %v1356_v25 = vadd.f32 %v2194_v53, %v1320_v24  ;;  %1037 = vmatmul.bf16.gmra.mxu2 %v1928_v21  ;;  %1286 = vmatmul.bf16.gmra.mxu3 %v1944_v22  ;;  %v1899_v22 = vld [vmem:[%s2135_s19 + $0x68] sm:$0xff] }
  0xce   : > { %v1388_v27 = vmax.f32 %v1356_v25, 0.0 }
  0xcf   : > { %v998_v29 = vpop.f32.mrf.mxu2  ;;  %v1247_v30 = vpop.f32.mrf.mxu3 }
  0xd0   : > { %v1958_v31 = vpack.c.bf16 %v1388_v27, %v1387_v26  ;;  %v534_v32 = vpop.f32.mrf.mxu0  ;;  %v751_v33 = vpop.f32.mrf.mxu1  ;;  %v1072_v34 = vmax.f32 %v823_v28, %v998_v29  ;;  %v1931_v27 = vld [vmem:[%s2147_s26 + $0x68] sm:$0xff] }
  0xd1   : > { %v824_v36 = vmax.f32 %v534_v32, %v751_v33  ;;  %v1947_v28 = vld [vmem:[%s2153_s29 + $0x68] sm:$0xff] }
  0xd2   : > { %2030 = vst [vmem:[%s2206_s10 + $0x8] sm:$0xff] %v1958_v31   ;;  %v1321_v35 = vmax.f32 %v1072_v34, %v1247_v30 }
  0xd4   : > { %v1357_v46 = vadd.f32 %v2194_v53, %v1321_v35 }
  0xd6   : > { %v1389_v49 = vmax.f32 %v1357_v46, 0.0  ;;  %v1916_v46 = vld [vmem:[%s2141_s23 + $0x70] sm:$0xff] }
  0xd7   : > { %v1000_v37 = vpop.f32.mrf.mxu2  ;;  %v1249_v38 = vpop.f32.mrf.mxu3 }
  0xd8   : > { %v1073_v41 = vmax.f32 %v824_v36, %v1000_v37  ;;  %v537_v42 = vpop.f32.mrf.mxu0  ;;  %v754_v43 = vpop.f32.mrf.mxu1 }
  0xd9   : > { %v825_v51 = vmax.f32 %v537_v42, %v754_v43 }
  0xda   : > { %v1322_v47 = vmax.f32 %v1073_v41, %v1249_v38 }
  0xdb   : > { %576 = vmatmul.bf16.gmra.mxu0 %v1897_v39  ;;  %793 = vmatmul.bf16.gmra.mxu1 %v1913_v40 }
  0xdc   : > { %v1358_v48 = vadd.f32 %v2194_v53, %v1322_v47  ;;  %1042 = vmatmul.bf16.gmra.mxu2 %v1929_v44  ;;  %1291 = vmatmul.bf16.gmra.mxu3 %v1945_v45  ;;  %v1900_v45 = vld [vmem:[%s2135_s19 + $0x70] sm:$0xff] }
  0xde   : > { %v1390_v50 = vmax.f32 %v1358_v48, 0.0 }
  0xdf   : > { %v1003_v52 = vpop.f32.mrf.mxu2  ;;  %v1252_v54 = vpop.f32.mrf.mxu3 }
  0xe0   : > { %v1963_v55 = vpack.c.bf16 %v1390_v50, %v1389_v49  ;;  %v539_v56 = vpop.f32.mrf.mxu0  ;;  %v756_v57 = vpop.f32.mrf.mxu1  ;;  %v1074_v58 = vmax.f32 %v825_v51, %v1003_v52  ;;  %v1932_v50 = vld [vmem:[%s2147_s26 + $0x70] sm:$0xff] }
  0xe1   : > { %v826_v60 = vmax.f32 %v539_v56, %v756_v57  ;;  %v1948_v51 = vld [vmem:[%s2153_s29 + $0x70] sm:$0xff] }
  0xe2   : > { %2031 = vst [vmem:[%s2206_s10 + $0x10] sm:$0xff] %v1963_v55   ;;  %v1323_v59 = vmax.f32 %v1074_v58, %v1252_v54 }
  0xe4   : > { %v1359_v6 = vadd.f32 %v2194_v53, %v1323_v59 }
  0xe6   : > { %v1391_v9 = vmax.f32 %v1359_v6, 0.0  ;;  %v1917_v6 = vld [vmem:[%s2141_s23 + $0x78] sm:$0xff] }
  0xe7   : > { %v1005_v61 = vpop.f32.mrf.mxu2  ;;  %v1254_v62 = vpop.f32.mrf.mxu3 }
  0xe8   : > { %v1075_v1 = vmax.f32 %v826_v60, %v1005_v61  ;;  %v542_v2 = vpop.f32.mrf.mxu0  ;;  %v759_v3 = vpop.f32.mrf.mxu1 }
  0xe9   : > { %v827_v11 = vmax.f32 %v542_v2, %v759_v3 }
  0xea   : > { %v1324_v7 = vmax.f32 %v1075_v1, %v1254_v62 }
  0xeb   : > { %581 = vmatmul.bf16.gmra.mxu0 %v1898_v63  ;;  %798 = vmatmul.bf16.gmra.mxu1 %v1914_v0 }
  0xec   : > { %v1360_v8 = vadd.f32 %v2194_v53, %v1324_v7  ;;  %1047 = vmatmul.bf16.gmra.mxu2 %v1930_v4  ;;  %1296 = vmatmul.bf16.gmra.mxu3 %v1946_v5  ;;  %v1901_v5 = vld [vmem:[%s2135_s19 + $0x78] sm:$0xff] }
  0xee   : > { %v1392_v10 = vmax.f32 %v1360_v8, 0.0 }
  0xef   : > { %v1008_v12 = vpop.f32.mrf.mxu2  ;;  %v1257_v13 = vpop.f32.mrf.mxu3 }
  0xf0   : > { %v1968_v14 = vpack.c.bf16 %v1392_v10, %v1391_v9  ;;  %v544_v15 = vpop.f32.mrf.mxu0  ;;  %v761_v16 = vpop.f32.mrf.mxu1  ;;  %v1076_v17 = vmax.f32 %v827_v11, %v1008_v12  ;;  %v1933_v10 = vld [vmem:[%s2147_s26 + $0x78] sm:$0xff] }
  0xf1   : > { %v828_v19 = vmax.f32 %v544_v15, %v761_v16  ;;  %v1949_v11 = vld [vmem:[%s2153_s29 + $0x78] sm:$0xff] }
  0xf2   : > { %2032 = vst [vmem:[%s2206_s10 + $0x18] sm:$0xff] %v1968_v14   ;;  %v1325_v18 = vmax.f32 %v1076_v17, %v1257_v13 }
  0xf4   : > { %v1361_v29 = vadd.f32 %v2194_v53, %v1325_v18 }
  0xf6   : > { %v1393_v32 = vmax.f32 %v1361_v29, 0.0 }
  0xf7   : > { %v1010_v20 = vpop.f32.mrf.mxu2  ;;  %v1259_v21 = vpop.f32.mrf.mxu3 }
  0xf8   : > { %v1077_v24 = vmax.f32 %v828_v19, %v1010_v20  ;;  %v547_v25 = vpop.f32.mrf.mxu0  ;;  %v764_v26 = vpop.f32.mrf.mxu1 }
  0xf9   : > { %v829_v34 = vmax.f32 %v547_v25, %v764_v26 }
  0xfa   : > { %v1326_v30 = vmax.f32 %v1077_v24, %v1259_v21 }
  0xfb   : > { %586 = vmatmul.bf16.gmra.mxu0 %v1899_v22  ;;  %803 = vmatmul.bf16.gmra.mxu1 %v1915_v23 }
  0xfc   : > { %v1362_v31 = vadd.f32 %v2194_v53, %v1326_v30  ;;  %1052 = vmatmul.bf16.gmra.mxu2 %v1931_v27  ;;  %1301 = vmatmul.bf16.gmra.mxu3 %v1947_v28 }
  0xfe   : > { %v1394_v33 = vmax.f32 %v1362_v31, 0.0 }
  0xff   : > { %v1013_v35 = vpop.f32.mrf.mxu2  ;;  %v1262_v36 = vpop.f32.mrf.mxu3 }
 0x100   : > { %v1973_v37 = vpack.c.bf16 %v1394_v33, %v1393_v32  ;;  %v549_v38 = vpop.f32.mrf.mxu0  ;;  %v766_v39 = vpop.f32.mrf.mxu1  ;;  %v1078_v40 = vmax.f32 %v829_v34, %v1013_v35 }
 0x101   : > { %v830_v42 = vmax.f32 %v549_v38, %v766_v39 }
 0x102   : > { %2033 = vst [vmem:[%s2206_s10 + $0x20] sm:$0xff] %v1973_v37   ;;  %v1327_v41 = vmax.f32 %v1078_v40, %v1262_v36 }
 0x104   : > { %v1363_v52 = vadd.f32 %v2194_v53, %v1327_v41 }
 0x106   : > { %v1395_v56 = vmax.f32 %v1363_v52, 0.0 }
 0x107   : > { %v1015_v43 = vpop.f32.mrf.mxu2  ;;  %v1264_v44 = vpop.f32.mrf.mxu3 }
 0x108   : > { %v1079_v47 = vmax.f32 %v830_v42, %v1015_v43  ;;  %v552_v48 = vpop.f32.mrf.mxu0  ;;  %v769_v49 = vpop.f32.mrf.mxu1 }
 0x109   : > { %v831_v58 = vmax.f32 %v552_v48, %v769_v49 }
 0x10a   : > { %v1328_v54 = vmax.f32 %v1079_v47, %v1264_v44 }
 0x10b   : > { %591 = vmatmul.bf16.gmra.mxu0 %v1900_v45  ;;  %808 = vmatmul.bf16.gmra.mxu1 %v1916_v46 }
 0x10c   : > { %v1364_v55 = vadd.f32 %v2194_v53, %v1328_v54  ;;  %1057 = vmatmul.bf16.gmra.mxu2 %v1932_v50  ;;  %1306 = vmatmul.bf16.gmra.mxu3 %v1948_v51 }
 0x10e   : > { %v1396_v57 = vmax.f32 %v1364_v55, 0.0 }
 0x10f   : > { %v1018_v59 = vpop.f32.mrf.mxu2  ;;  %v1267_v60 = vpop.f32.mrf.mxu3 }
 0x110   : > { %v1978_v61 = vpack.c.bf16 %v1396_v57, %v1395_v56  ;;  %v554_v62 = vpop.f32.mrf.mxu0  ;;  %v771_v63 = vpop.f32.mrf.mxu1  ;;  %v1080_v0 = vmax.f32 %v831_v58, %v1018_v59 }
 0x111   : > { %v832_v2 = vmax.f32 %v554_v62, %v771_v63 }
 0x112   : > { %2034 = vst [vmem:[%s2206_s10 + $0x28] sm:$0xff] %v1978_v61   ;;  %v1329_v1 = vmax.f32 %v1080_v0, %v1267_v60 }
 0x114   : > { %v1365_v12 = vadd.f32 %v2194_v53, %v1329_v1 }
 0x116   : > { %v1397_v15 = vmax.f32 %v1365_v12, 0.0 }
 0x117   : > { %v1020_v3 = vpop.f32.mrf.mxu2  ;;  %v1269_v4 = vpop.f32.mrf.mxu3 }
 0x118   : > { %v1081_v7 = vmax.f32 %v832_v2, %v1020_v3  ;;  %v557_v8 = vpop.f32.mrf.mxu0  ;;  %v774_v9 = vpop.f32.mrf.mxu1 }
 0x119   : > { %v833_v17 = vmax.f32 %v557_v8, %v774_v9 }
 0x11a   : > { %v1330_v13 = vmax.f32 %v1081_v7, %v1269_v4 }
 0x11b   : > { %596 = vmatmul.bf16.gmra.mxu0 %v1901_v5  ;;  %813 = vmatmul.bf16.gmra.mxu1 %v1917_v6 }
 0x11c   : > { %v1366_v14 = vadd.f32 %v2194_v53, %v1330_v13  ;;  %1062 = vmatmul.bf16.gmra.mxu2 %v1933_v10  ;;  %1311 = vmatmul.bf16.gmra.mxu3 %v1949_v11 }
 0x11e   : > { %v1398_v16 = vmax.f32 %v1366_v14, 0.0 }
 0x11f   : > { %v1023_v18 = vpop.f32.mrf.mxu2  ;;  %v1272_v19 = vpop.f32.mrf.mxu3 }
 0x120   : > { %v1983_v20 = vpack.c.bf16 %v1398_v16, %v1397_v15  ;;  %v559_v21 = vpop.f32.mrf.mxu0  ;;  %v776_v22 = vpop.f32.mrf.mxu1  ;;  %v1082_v23 = vmax.f32 %v833_v17, %v1023_v18 }
 0x121   : > { %v834_v25 = vmax.f32 %v559_v21, %v776_v22 }
 0x122   : > { %2035 = vst [vmem:[%s2206_s10 + $0x30] sm:$0xff] %v1983_v20   ;;  %v1331_v24 = vmax.f32 %v1082_v23, %v1272_v19 }
 0x124   : > { %v1367_v31 = vadd.f32 %v2194_v53, %v1331_v24 }
 0x126   : > { %v1399_v34 = vmax.f32 %v1367_v31, 0.0 }
 0x127   : > { %v1025_v26 = vpop.f32.mrf.mxu2  ;;  %v1274_v27 = vpop.f32.mrf.mxu3 }
 0x128   : > { %v1083_v28 = vmax.f32 %v834_v25, %v1025_v26  ;;  %v562_v29 = vpop.f32.mrf.mxu0  ;;  %v779_v30 = vpop.f32.mrf.mxu1 }
 0x129   : > { %v835_v36 = vmax.f32 %v562_v29, %v779_v30 }
 0x12a   : > { %v1332_v32 = vmax.f32 %v1083_v28, %v1274_v27 }
 0x12c   : > { %v1368_v33 = vadd.f32 %v2194_v53, %v1332_v32 }
 0x12e   : > { %v1400_v35 = vmax.f32 %v1368_v33, 0.0 }
 0x12f   : > { %v1028_v37 = vpop.f32.mrf.mxu2  ;;  %v1277_v38 = vpop.f32.mrf.mxu3 }
 0x130   : > { %v1988_v39 = vpack.c.bf16 %v1400_v35, %v1399_v34  ;;  %v564_v40 = vpop.f32.mrf.mxu0  ;;  %v781_v41 = vpop.f32.mrf.mxu1  ;;  %v1084_v42 = vmax.f32 %v835_v36, %v1028_v37 }
 0x131   : > { %v836_v44 = vmax.f32 %v564_v40, %v781_v41 }
 0x132   : > { %2036 = vst [vmem:[%s2206_s10 + $0x38] sm:$0xff] %v1988_v39   ;;  %v1333_v43 = vmax.f32 %v1084_v42, %v1277_v38 }
 0x134   : > { %v1369_v50 = vadd.f32 %v2194_v53, %v1333_v43 }
 0x136   : > { %v1401_v54 = vmax.f32 %v1369_v50, 0.0 }
 0x137   : > { %v1030_v45 = vpop.f32.mrf.mxu2  ;;  %v1279_v46 = vpop.f32.mrf.mxu3 }
 0x138   : > { %v1085_v47 = vmax.f32 %v836_v44, %v1030_v45  ;;  %v567_v48 = vpop.f32.mrf.mxu0  ;;  %v784_v49 = vpop.f32.mrf.mxu1 }
 0x139   : > { %v837_v56 = vmax.f32 %v567_v48, %v784_v49 }
 0x13a   : > { %v1334_v51 = vmax.f32 %v1085_v47, %v1279_v46 }
 0x13c   : > { %v1370_v52 = vadd.f32 %v2194_v53, %v1334_v51 }
 0x13e   : > { %v1402_v55 = vmax.f32 %v1370_v52, 0.0 }
 0x13f   : > { %v1033_v57 = vpop.f32.mrf.mxu2  ;;  %v1282_v58 = vpop.f32.mrf.mxu3 }
 0x140   : > { %v1993_v59 = vpack.c.bf16 %v1402_v55, %v1401_v54  ;;  %v569_v60 = vpop.f32.mrf.mxu0  ;;  %v786_v61 = vpop.f32.mrf.mxu1  ;;  %v1086_v62 = vmax.f32 %v837_v56, %v1033_v57 }
 0x141   : > { %v838_v0 = vmax.f32 %v569_v60, %v786_v61 }
 0x142   : > { %2037 = vst [vmem:[%s2206_s10 + $0x40] sm:$0xff] %v1993_v59   ;;  %v1335_v63 = vmax.f32 %v1086_v62, %v1282_v58 }
 0x144   : > { %v1371_v6 = vadd.f32 %v2194_v53, %v1335_v63 }
 0x146   : > { %v1403_v9 = vmax.f32 %v1371_v6, 0.0 }
 0x147   : > { %v1035_v1 = vpop.f32.mrf.mxu2  ;;  %v1284_v2 = vpop.f32.mrf.mxu3 }
 0x148   : > { %v1087_v3 = vmax.f32 %v838_v0, %v1035_v1  ;;  %v572_v4 = vpop.f32.mrf.mxu0  ;;  %v789_v5 = vpop.f32.mrf.mxu1 }
 0x149   : > { %v839_v11 = vmax.f32 %v572_v4, %v789_v5 }
 0x14a   : > { %v1336_v7 = vmax.f32 %v1087_v3, %v1284_v2 }
 0x14c   : > { %v1372_v8 = vadd.f32 %v2194_v53, %v1336_v7 }
 0x14e   : > { %v1404_v10 = vmax.f32 %v1372_v8, 0.0 }
 0x14f   : > { %v1038_v12 = vpop.f32.mrf.mxu2  ;;  %v1287_v13 = vpop.f32.mrf.mxu3 }
 0x150   : > { %v1998_v14 = vpack.c.bf16 %v1404_v10, %v1403_v9  ;;  %v574_v15 = vpop.f32.mrf.mxu0  ;;  %v791_v16 = vpop.f32.mrf.mxu1  ;;  %v1088_v17 = vmax.f32 %v839_v11, %v1038_v12 }
 0x151   : > { %v840_v19 = vmax.f32 %v574_v15, %v791_v16 }
 0x152   : > { %2038 = vst [vmem:[%s2206_s10 + $0x48] sm:$0xff] %v1998_v14   ;;  %v1337_v18 = vmax.f32 %v1088_v17, %v1287_v13 }
 0x154   : > { %v1373_v25 = vadd.f32 %v2194_v53, %v1337_v18 }
 0x156   : > { %v1405_v28 = vmax.f32 %v1373_v25, 0.0 }
 0x157   : > { %v1040_v20 = vpop.f32.mrf.mxu2  ;;  %v1289_v21 = vpop.f32.mrf.mxu3 }
 0x158   : > { %v1089_v22 = vmax.f32 %v840_v19, %v1040_v20  ;;  %v577_v23 = vpop.f32.mrf.mxu0  ;;  %v794_v24 = vpop.f32.mrf.mxu1 }
 0x159   : > { %v841_v30 = vmax.f32 %v577_v23, %v794_v24 }
 0x15a   : > { %v1338_v26 = vmax.f32 %v1089_v22, %v1289_v21 }
 0x15c   : > { %v1374_v27 = vadd.f32 %v2194_v53, %v1338_v26 }
 0x15e   : > { %v1406_v29 = vmax.f32 %v1374_v27, 0.0 }
 0x15f   : > { %v1043_v31 = vpop.f32.mrf.mxu2  ;;  %v1292_v32 = vpop.f32.mrf.mxu3 }
 0x160   : > { %v2003_v33 = vpack.c.bf16 %v1406_v29, %v1405_v28  ;;  %v579_v34 = vpop.f32.mrf.mxu0  ;;  %v796_v35 = vpop.f32.mrf.mxu1  ;;  %v1090_v36 = vmax.f32 %v841_v30, %v1043_v31 }
 0x161   : > { %v842_v38 = vmax.f32 %v579_v34, %v796_v35 }
 0x162   : > { %2039 = vst [vmem:[%s2206_s10 + $0x50] sm:$0xff] %v2003_v33   ;;  %v1339_v37 = vmax.f32 %v1090_v36, %v1292_v32 }
 0x164   : > { %v1375_v44 = vadd.f32 %v2194_v53, %v1339_v37 }
 0x166   : > { %v1407_v47 = vmax.f32 %v1375_v44, 0.0 }
 0x167   : > { %v1045_v39 = vpop.f32.mrf.mxu2  ;;  %v1294_v40 = vpop.f32.mrf.mxu3 }
 0x168   : > { %v1091_v41 = vmax.f32 %v842_v38, %v1045_v39  ;;  %v582_v42 = vpop.f32.mrf.mxu0  ;;  %v799_v43 = vpop.f32.mrf.mxu1 }
 0x169   : > { %v843_v49 = vmax.f32 %v582_v42, %v799_v43 }
 0x16a   : > { %v1340_v45 = vmax.f32 %v1091_v41, %v1294_v40 }
 0x16c   : > { %v1376_v46 = vadd.f32 %v2194_v53, %v1340_v45 }
 0x16e   : > { %v1408_v48 = vmax.f32 %v1376_v46, 0.0 }
 0x16f   : > { %v1048_v50 = vpop.f32.mrf.mxu2  ;;  %v1297_v51 = vpop.f32.mrf.mxu3 }
 0x170   : > { %v2008_v52 = vpack.c.bf16 %v1408_v48, %v1407_v47  ;;  %v584_v54 = vpop.f32.mrf.mxu0  ;;  %v801_v55 = vpop.f32.mrf.mxu1  ;;  %v1092_v56 = vmax.f32 %v843_v49, %v1048_v50 }
 0x171   : > { %v844_v58 = vmax.f32 %v584_v54, %v801_v55 }
 0x172   : > { %2040 = vst [vmem:[%s2206_s10 + $0x58] sm:$0xff] %v2008_v52   ;;  %v1341_v57 = vmax.f32 %v1092_v56, %v1297_v51 }
 0x174   : > { %v1377_v0 = vadd.f32 %v2194_v53, %v1341_v57 }
 0x176   : > { %v1409_v3 = vmax.f32 %v1377_v0, 0.0 }
 0x177   : > { %v1050_v59 = vpop.f32.mrf.mxu2  ;;  %v1299_v60 = vpop.f32.mrf.mxu3 }
 0x178   : > { %v1093_v61 = vmax.f32 %v844_v58, %v1050_v59  ;;  %v587_v62 = vpop.f32.mrf.mxu0  ;;  %v804_v63 = vpop.f32.mrf.mxu1 }
 0x179   : > { %v845_v5 = vmax.f32 %v587_v62, %v804_v63 }
 0x17a   : > { %v1342_v1 = vmax.f32 %v1093_v61, %v1299_v60 }
 0x17c   : > { %v1378_v2 = vadd.f32 %v2194_v53, %v1342_v1 }
 0x17e   : > { %v1410_v4 = vmax.f32 %v1378_v2, 0.0 }
 0x17f   : > { %v1053_v6 = vpop.f32.mrf.mxu2  ;;  %v1302_v7 = vpop.f32.mrf.mxu3 }
 0x180   : > { %v2013_v8 = vpack.c.bf16 %v1410_v4, %v1409_v3  ;;  %v589_v9 = vpop.f32.mrf.mxu0  ;;  %v806_v10 = vpop.f32.mrf.mxu1  ;;  %v1094_v11 = vmax.f32 %v845_v5, %v1053_v6 }
 0x181   : > { %v846_v13 = vmax.f32 %v589_v9, %v806_v10 }
 0x182   : > { %2041 = vst [vmem:[%s2206_s10 + $0x60] sm:$0xff] %v2013_v8   ;;  %v1343_v12 = vmax.f32 %v1094_v11, %v1302_v7 }
 0x184   : > { %v1379_v19 = vadd.f32 %v2194_v53, %v1343_v12 }
 0x186   : > { %v1411_v22 = vmax.f32 %v1379_v19, 0.0 }
 0x187   : > { %v1055_v14 = vpop.f32.mrf.mxu2  ;;  %v1304_v15 = vpop.f32.mrf.mxu3 }
 0x188   : > { %v1095_v16 = vmax.f32 %v846_v13, %v1055_v14  ;;  %v592_v17 = vpop.f32.mrf.mxu0  ;;  %v809_v18 = vpop.f32.mrf.mxu1 }
 0x189   : > { %v847_v24 = vmax.f32 %v592_v17, %v809_v18 }
 0x18a   : > { %v1344_v20 = vmax.f32 %v1095_v16, %v1304_v15 }
 0x18c   : > { %v1380_v21 = vadd.f32 %v2194_v53, %v1344_v20 }
 0x18e   : > { %v1412_v23 = vmax.f32 %v1380_v21, 0.0 }
 0x18f   : > { %v1058_v25 = vpop.f32.mrf.mxu2  ;;  %v1307_v26 = vpop.f32.mrf.mxu3 }
 0x190   : > { %v2018_v27 = vpack.c.bf16 %v1412_v23, %v1411_v22  ;;  %v594_v28 = vpop.f32.mrf.mxu0  ;;  %v811_v29 = vpop.f32.mrf.mxu1  ;;  %v1096_v30 = vmax.f32 %v847_v24, %v1058_v25 }
 0x191   : > { %v848_v32 = vmax.f32 %v594_v28, %v811_v29 }
 0x192   : > { %2042 = vst [vmem:[%s2206_s10 + $0x68] sm:$0xff] %v2018_v27   ;;  %v1345_v31 = vmax.f32 %v1096_v30, %v1307_v26 }
 0x194   : > { %v1381_v38 = vadd.f32 %v2194_v53, %v1345_v31 }
 0x196   : > { %v1413_v41 = vmax.f32 %v1381_v38, 0.0 }
 0x197   : > { %v1060_v33 = vpop.f32.mrf.mxu2  ;;  %v1309_v34 = vpop.f32.mrf.mxu3 }
 0x198   : > { %v1097_v35 = vmax.f32 %v848_v32, %v1060_v33  ;;  %v597_v36 = vpop.f32.mrf.mxu0  ;;  %v814_v37 = vpop.f32.mrf.mxu1 }
 0x199   : > { %v849_v43 = vmax.f32 %v597_v36, %v814_v37 }
 0x19a   : > { %v1346_v39 = vmax.f32 %v1097_v35, %v1309_v34 }
 0x19c   : > { %v1382_v40 = vadd.f32 %v2194_v53, %v1346_v39 }
 0x19e   : > { %v1414_v42 = vmax.f32 %v1382_v40, 0.0 }
 0x19f   : > { %v1063_v44 = vpop.f32.mrf.mxu2  ;;  %v1312_v45 = vpop.f32.mrf.mxu3 }
 0x1a0   : > { %v2023_v46 = vpack.c.bf16 %v1414_v42, %v1413_v41  ;;  %v1098_v47 = vmax.f32 %v849_v43, %v1063_v44  ;;  %v599_v48 = vpop.f32.mrf.mxu0  ;;  %v816_v49 = vpop.f32.mrf.mxu1 }
 0x1a1   : > { %v850_v51 = vmax.f32 %v599_v48, %v816_v49 }
 0x1a2   : > { %2043 = vst [vmem:[%s2206_s10 + $0x70] sm:$0xff] %v2023_v46   ;;  %v1347_v50 = vmax.f32 %v1098_v47, %v1312_v45 }
 0x1a4   : > { %v1383_v56 = vadd.f32 %v2194_v53, %v1347_v50 }
 0x1a6   : > { %v1415_v59 = vmax.f32 %v1383_v56, 0.0 }
 0x1a7   : > { %v1065_v52 = vpop.f32.mrf.mxu2  ;;  %v1314_v55 = vpop.f32.mrf.mxu3 }
 0x1a8   : > { %v1099_v54 = vmax.f32 %v850_v51, %v1065_v52 }
 0x1aa   : > { %v1348_v57 = vmax.f32 %v1099_v54, %v1314_v55 }
 0x1ac   : > { %v1384_v58 = vadd.f32 %v2194_v53, %v1348_v57 }
 0x1ae   : > { %v1416_v60 = vmax.f32 %v1384_v58, 0.0 }
 0x1b0   : > { %v2028_v61 = vpack.c.bf16 %v1416_v60, %v1415_v59 }
 0x1b2   : > { %2044 = vst [vmem:[%s2206_s10 + $0x78] sm:$0xff] %v2028_v61  }
 0x1b3 PF: > { %s16_s21 = sadd.s32 1, %s2060_s21  }
 0x1b4   : > { %p13_p4 = scmp.ge.s32.totalorder %s16_s21, 4  }
 0x1b6   :  { %15 = sbr.rel (!%p13_p4) target bundleno = 1 (0x1), region = 83 }

// kernel: forward.4
= control target key start
LH: loop header
LB: loop body
LE: loop exit
PB: predicated region body
PF: predicated region fallthrough
CT: control target
= control target key end

     0   :  { %s1350_s4 = inlined_call_operand.vmem [shape: bf16[256,128], index: 4, kind: input, shape index: {}]   ;;  %s1351_s0 = inlined_call_operand.vmem [shape: bf16[64,256], index: 0, kind: input, shape index: {}]   ;;  %s1352_s1 = inlined_call_operand.vmem [shape: bf16[64,256], index: 1, kind: input, shape index: {}]   ;;  %s1353_s2 = inlined_call_operand.vmem [shape: bf16[64,256], index: 2, kind: input, shape index: {}]   ;;  %s1354_s3 = inlined_call_operand.vmem [shape: bf16[64,256], index: 3, kind: input, shape index: {}]   ;;  %s1355_s5 = inlined_call_operand.vmem [shape: f32[1,128], index: 5, kind: input, shape index: {}]   ;;  %s1356_s6 = inlined_call_operand.vmem [shape: bf16[64,128], index: 6, kind: output, shape index: {}]  }
   0x1   :  { %v941_v0 = vld [vmem:[%s1350_s4 + $0x38] sm:$0xff]  ;;  %v953_v2 = vld [vmem:[%s1350_s4 + $0x30] sm:$0xff]  ;;  %v967_v4 = vld [vmem:[%s1350_s4 + $0x28] sm:$0xff] }
   0x2   :  { %v946_v1 = vld [vmem:[%s1350_s4 + $0x78] sm:$0xff]  ;;  %199 = vmatpush.bf16.msra.mxu0 %v941_v0  ;;  %v958_v3 = vld [vmem:[%s1350_s4 + $0x70] sm:$0xff]  ;;  %305 = vmatpush.bf16.msra.mxu2 %v941_v0  ;;  %v972_v5 = vld [vmem:[%s1350_s4 + $0x68] sm:$0xff] }
   0x3   :  { %228 = vmatpush.bf16.msra.mxu1 %v946_v1  ;;  %334 = vmatpush.bf16.msra.mxu3 %v946_v1  ;;  %v981_v6 = vld [vmem:[%s1350_s4 + $0x20] sm:$0xff]  ;;  %v995_v8 = vld [vmem:[%s1350_s4 + $0x18] sm:$0xff]  ;;  %v1009_v10 = vld [vmem:[%s1350_s4 + $0x10] sm:$0xff] }
   0x4   :  { %v986_v7 = vld [vmem:[%s1350_s4 + $0x60] sm:$0xff]  ;;  %v1000_v9 = vld [vmem:[%s1350_s4 + $0x58] sm:$0xff]  ;;  %v1014_v11 = vld [vmem:[%s1350_s4 + $0x50] sm:$0xff] }
   0x5   :  { %v1023_v12 = vld [vmem:[%s1350_s4 + $0x8] sm:$0xff]  ;;  %v1035_v14 = vld [vmem:[%s1350_s4] sm:$0xff]  ;;  %v649_v28 = vld [vmem:[%s1351_s0 + $0x10] sm:$0xf] }
   0x6   :  { %200 = vmatpush.bf16.msra.mxu0 %v953_v2  ;;  %306 = vmatpush.bf16.msra.mxu2 %v953_v2  ;;  %v1028_v13 = vld [vmem:[%s1350_s4 + $0x48] sm:$0xff]  ;;  %v1040_v15 = vld [vmem:[%s1350_s4 + $0x40] sm:$0xff]  ;;  %v850_v29 = vld [vmem:[%s1351_s0 + $0x14] sm:$0xf0] }
   0x7   :  { %229 = vmatpush.bf16.msra.mxu1 %v958_v3  ;;  %335 = vmatpush.bf16.msra.mxu3 %v958_v3  ;;  %v641_v16 = vld [vmem:[%s1351_s0] sm:$0xf]  ;;  %v848_v17 = vld [vmem:[%s1351_s0 + $0x4] sm:$0xf0]  ;;  %v847_v18 = vld [vmem:[%s1351_s0 + $0x4] sm:$0xf]  ;;  %v650_v36 = vor.u32 %v850_v29, %v649_v28 }
   0x8   :  { %v643_v19 = vld [vmem:[%s1351_s0 + $0x8] sm:$0xf0]  ;;  %v737_v20 = vld [vmem:[%s1352_s1] sm:$0xf]  ;;  %v856_v21 = vld [vmem:[%s1352_s1 + $0x4] sm:$0xf0]  ;;  %v642_v24 = vor.u32 %v848_v17, %v641_v16 }
   0x9   :  { %v855_v22 = vld [vmem:[%s1352_s1 + $0x4] sm:$0xf]  ;;  %v739_v23 = vld [vmem:[%s1352_s1 + $0x8] sm:$0xf0]  ;;  %v646_v25 = vor.u32 %v847_v18, %v643_v19  ;;  %v738_v26 = vor.u32 %v856_v21, %v737_v20  ;;  %v849_v30 = vld [vmem:[%s1351_s0 + $0x14] sm:$0xf] }
   0xa   :  { %201 = vmatpush.bf16.msra.mxu0 %v967_v4  ;;  %307 = vmatpush.bf16.msra.mxu2 %v967_v4  ;;  %v742_v27 = vor.u32 %v855_v22, %v739_v23  ;;  %v651_v31 = vld [vmem:[%s1351_s0 + $0x18] sm:$0xf0]  ;;  %v745_v32 = vld [vmem:[%s1352_s1 + $0x10] sm:$0xf]  ;;  %v858_v33 = vld [vmem:[%s1352_s1 + $0x14] sm:$0xf0] }
   0xb   :  { %230 = vmatpush.bf16.msra.mxu1 %v972_v5  ;;  %336 = vmatpush.bf16.msra.mxu3 %v972_v5  ;;  %v857_v34 = vld [vmem:[%s1352_s1 + $0x14] sm:$0xf]  ;;  %v747_v35 = vld [vmem:[%s1352_s1 + $0x18] sm:$0xf0]  ;;  %v654_v37 = vor.u32 %v849_v30, %v651_v31  ;;  %v746_v38 = vor.u32 %v858_v33, %v745_v32  ;;  %v657_v40 = vld [vmem:[%s1351_s0 + $0x20] sm:$0xf] }
   0xc   :  { %v750_v39 = vor.u32 %v857_v34, %v747_v35  ;;  %v852_v41 = vld [vmem:[%s1351_s0 + $0x24] sm:$0xf0]  ;;  %v851_v42 = vld [vmem:[%s1351_s0 + $0x24] sm:$0xf]  ;;  %v659_v43 = vld [vmem:[%s1351_s0 + $0x28] sm:$0xf0] }
   0xd   :  { %v753_v44 = vld [vmem:[%s1352_s1 + $0x20] sm:$0xf]  ;;  %v860_v45 = vld [vmem:[%s1352_s1 + $0x24] sm:$0xf0]  ;;  %v859_v46 = vld [vmem:[%s1352_s1 + $0x24] sm:$0xf]  ;;  %v658_v48 = vor.u32 %v852_v41, %v657_v40  ;;  %v662_v49 = vor.u32 %v851_v42, %v659_v43 }
   0xe   :  { %202 = vmatpush.bf16.msra.mxu0 %v981_v6  ;;  %308 = vmatpush.bf16.msra.mxu2 %v981_v6  ;;  %v755_v47 = vld [vmem:[%s1352_s1 + $0x28] sm:$0xf0]  ;;  %v754_v50 = vor.u32 %v860_v45, %v753_v44  ;;  %v665_v52 = vld [vmem:[%s1351_s0 + $0x30] sm:$0xf]  ;;  %v854_v53 = vld [vmem:[%s1351_s0 + $0x34] sm:$0xf0] }
   0xf   :  { %231 = vmatpush.bf16.msra.mxu1 %v986_v7  ;;  %337 = vmatpush.bf16.msra.mxu3 %v986_v7  ;;  %v758_v51 = vor.u32 %v859_v46, %v755_v47  ;;  %v853_v54 = vld [vmem:[%s1351_s0 + $0x34] sm:$0xf]  ;;  %v667_v55 = vld [vmem:[%s1351_s0 + $0x38] sm:$0xf0]  ;;  %v761_v56 = vld [vmem:[%s1352_s1 + $0x30] sm:$0xf]  ;;  %v666_v60 = vor.u32 %v854_v53, %v665_v52 }
  0x10   :  { %v862_v57 = vld [vmem:[%s1352_s1 + $0x34] sm:$0xf0]  ;;  %v861_v58 = vld [vmem:[%s1352_s1 + $0x34] sm:$0xf]  ;;  %v763_v59 = vld [vmem:[%s1352_s1 + $0x38] sm:$0xf0]  ;;  %v670_v61 = vor.u32 %v853_v54, %v667_v55 }
  0x11   :  { %v762_v62 = vor.u32 %v862_v57, %v761_v56  ;;  %v766_v63 = vor.u32 %v861_v58, %v763_v59  ;;  %v809_v16 = vld [vmem:[%s1354_s3 + $0x10] sm:$0xf]  ;;  %v874_v17 = vld [vmem:[%s1354_s3 + $0x14] sm:$0xf0]  ;;  %v873_v18 = vld [vmem:[%s1354_s3 + $0x14] sm:$0xf] }
  0x12   :  { %203 = vmatpush.bf16.msra.mxu0 %v995_v8  ;;  %309 = vmatpush.bf16.msra.mxu2 %v995_v8  ;;  %v811_v19 = vld [vmem:[%s1354_s3 + $0x18] sm:$0xf0]  ;;  %v810_v22 = vor.u32 %v874_v17, %v809_v16  ;;  %v817_v28 = vld [vmem:[%s1354_s3 + $0x20] sm:$0xf]  ;;  %v876_v29 = vld [vmem:[%s1354_s3 + $0x24] sm:$0xf0] }
  0x13   :  { %232 = vmatpush.bf16.msra.mxu1 %v1000_v9  ;;  %338 = vmatpush.bf16.msra.mxu3 %v1000_v9  ;;  %v814_v23 = vor.u32 %v873_v18, %v811_v19  ;;  %v875_v30 = vld [vmem:[%s1354_s3 + $0x24] sm:$0xf]  ;;  %v819_v31 = vld [vmem:[%s1354_s3 + $0x28] sm:$0xf0]  ;;  %v818_v34 = vor.u32 %v876_v29, %v817_v28  ;;  %v825_v40 = vld [vmem:[%s1354_s3 + $0x30] sm:$0xf] }
  0x14   :  { %v822_v35 = vor.u32 %v875_v30, %v819_v31  ;;  %v878_v41 = vld [vmem:[%s1354_s3 + $0x34] sm:$0xf0]  ;;  %v877_v42 = vld [vmem:[%s1354_s3 + $0x34] sm:$0xf]  ;;  %v827_v43 = vld [vmem:[%s1354_s3 + $0x38] sm:$0xf0] }
  0x15   :  { %v826_v46 = vor.u32 %v878_v41, %v825_v40  ;;  %v830_v47 = vor.u32 %v877_v42, %v827_v43  ;;  %v1313_v42 = vld [vmem:[%s1355_s5] ss:$0 sm:$0xff] }
  0x16   :  { %204 = vmatpush.bf16.msra.mxu0 %v1009_v10  ;;  %310 = vmatpush.bf16.msra.mxu2 %v1009_v10 }
  0x17   :  { %233 = vmatpush.bf16.msra.mxu1 %v1014_v11  ;;  %339 = vmatpush.bf16.msra.mxu3 %v1014_v11 }
  0x1a   :  { %205 = vmatpush.bf16.msra.mxu0 %v1023_v12  ;;  %311 = vmatpush.bf16.msra.mxu2 %v1023_v12 }
  0x1b   :  { %234 = vmatpush.bf16.msra.mxu1 %v1028_v13  ;;  %340 = vmatpush.bf16.msra.mxu3 %v1028_v13 }
  0x1e   :  { %206 = vmatpush.bf16.msra.mxu0 %v1035_v14  ;;  %312 = vmatpush.bf16.msra.mxu2 %v1035_v14 }
  0x1f   :  { %235 = vmatpush.bf16.msra.mxu1 %v1040_v15  ;;  %341 = vmatpush.bf16.msra.mxu3 %v1040_v15 }
  0x21   :  { %207 = vmatmul.bf16.vlgmr.msra.gmra.mxu0 %v642_v24  ;;  %313 = vmatmul.bf16.vlgmr.msra.gmra.mxu2 %v738_v26  ;;  %v785_v24 = vld [vmem:[%s1353_s2 + $0x20] sm:$0xf]  ;;  %v867_v26 = vld [vmem:[%s1353_s2 + $0x24] sm:$0xf] }
  0x22   :  { %533 = vmatpush.bf16.msrb.mxu2 %v941_v0  ;;  %236 = vmatmul.bf16.vlgmr.msra.gmra.mxu1 %v646_v25  ;;  %v868_v25 = vld [vmem:[%s1353_s2 + $0x24] sm:$0xf0] }
  0x23   :  { %562 = vmatpush.bf16.msrb.mxu3 %v946_v1  ;;  %419 = vmatpush.bf16.msrb.mxu0 %v941_v0  ;;  %v769_v0 = vld [vmem:[%s1353_s2] sm:$0xf]  ;;  %v786_v32 = vor.u32 %v868_v25, %v785_v24 }
  0x24   :  { %342 = vmatmul.bf16.vlgmr.msra.gmra.mxu3 %v742_v27  ;;  %448 = vmatpush.bf16.msrb.mxu1 %v946_v1  ;;  %v864_v1 = vld [vmem:[%s1353_s2 + $0x4] sm:$0xf0]  ;;  %v787_v27 = vld [vmem:[%s1353_s2 + $0x28] sm:$0xf0] }
  0x25   :  { %v790_v33 = vor.u32 %v867_v26, %v787_v27 }
  0x26   :  { %534 = vmatpush.bf16.msrb.mxu2 %v953_v2 }
  0x27   :  { %563 = vmatpush.bf16.msrb.mxu3 %v958_v3  ;;  %420 = vmatpush.bf16.msrb.mxu0 %v953_v2  ;;  %v863_v2 = vld [vmem:[%s1353_s2 + $0x4] sm:$0xf] }
  0x28   :  { %449 = vmatpush.bf16.msrb.mxu1 %v958_v3  ;;  %v771_v3 = vld [vmem:[%s1353_s2 + $0x8] sm:$0xf0] }
  0x2a   :  { %535 = vmatpush.bf16.msrb.mxu2 %v967_v4 }
  0x2b   :  { %564 = vmatpush.bf16.msrb.mxu3 %v972_v5  ;;  %421 = vmatpush.bf16.msrb.mxu0 %v967_v4  ;;  %v801_v4 = vld [vmem:[%s1354_s3] sm:$0xf] }
  0x2c   :  { %450 = vmatpush.bf16.msrb.mxu1 %v972_v5  ;;  %v872_v5 = vld [vmem:[%s1354_s3 + $0x4] sm:$0xf0] }
  0x2e   :  { %536 = vmatpush.bf16.msrb.mxu2 %v981_v6 }
  0x2f   :  { %565 = vmatpush.bf16.msrb.mxu3 %v986_v7  ;;  %422 = vmatpush.bf16.msrb.mxu0 %v981_v6  ;;  %v871_v6 = vld [vmem:[%s1354_s3 + $0x4] sm:$0xf] }
  0x30   :  { %451 = vmatpush.bf16.msrb.mxu1 %v986_v7  ;;  %v803_v7 = vld [vmem:[%s1354_s3 + $0x8] sm:$0xf0] }
  0x31   :  { %212 = vmatmul.bf16.gmra.mxu0 %v650_v36  ;;  %318 = vmatmul.bf16.gmra.mxu2 %v746_v38  ;;  %v793_v36 = vld [vmem:[%s1353_s2 + $0x30] sm:$0xf]  ;;  %v869_v38 = vld [vmem:[%s1353_s2 + $0x34] sm:$0xf] }
  0x32   :  { %537 = vmatpush.bf16.msrb.mxu2 %v995_v8  ;;  %241 = vmatmul.bf16.gmra.mxu1 %v654_v37  ;;  %v870_v37 = vld [vmem:[%s1353_s2 + $0x34] sm:$0xf0] }
  0x33   :  { %566 = vmatpush.bf16.msrb.mxu3 %v1000_v9  ;;  %423 = vmatpush.bf16.msrb.mxu0 %v995_v8  ;;  %v770_v8 = vor.u32 %v864_v1, %v769_v0  ;;  %v794_v44 = vor.u32 %v870_v37, %v793_v36 }
  0x34   :  { %347 = vmatmul.bf16.gmra.mxu3 %v750_v39  ;;  %452 = vmatpush.bf16.msrb.mxu1 %v1000_v9  ;;  %v774_v9 = vor.u32 %v863_v2, %v771_v3  ;;  %v795_v39 = vld [vmem:[%s1353_s2 + $0x38] sm:$0xf0] }
  0x35   :  { %v798_v45 = vor.u32 %v869_v38, %v795_v39 }
  0x36   :  { %538 = vmatpush.bf16.msrb.mxu2 %v1009_v10 }
  0x37   :  { %567 = vmatpush.bf16.msrb.mxu3 %v1014_v11  ;;  %424 = vmatpush.bf16.msrb.mxu0 %v1009_v10  ;;  %v802_v10 = vor.u32 %v872_v5, %v801_v4 }
  0x38   :  { %453 = vmatpush.bf16.msrb.mxu1 %v1014_v11  ;;  %v806_v11 = vor.u32 %v871_v6, %v803_v7 }
  0x3a   :  { %539 = vmatpush.bf16.msrb.mxu2 %v1023_v12 }
  0x3b   :  { %568 = vmatpush.bf16.msrb.mxu3 %v1028_v13  ;;  %425 = vmatpush.bf16.msrb.mxu0 %v1023_v12  ;;  %v777_v12 = vld [vmem:[%s1353_s2 + $0x10] sm:$0xf] }
  0x3c   :  { %454 = vmatpush.bf16.msrb.mxu1 %v1028_v13  ;;  %v866_v13 = vld [vmem:[%s1353_s2 + $0x14] sm:$0xf0] }
  0x3d   :  { %v778_v20 = vor.u32 %v866_v13, %v777_v12 }
  0x3e   :  { %540 = vmatpush.bf16.msrb.mxu2 %v1035_v14 }
  0x3f   :  { %569 = vmatpush.bf16.msrb.mxu3 %v1040_v15  ;;  %426 = vmatpush.bf16.msrb.mxu0 %v1035_v14  ;;  %v865_v14 = vld [vmem:[%s1353_s2 + $0x14] sm:$0xf] }
  0x40   :  { %455 = vmatpush.bf16.msrb.mxu1 %v1040_v15  ;;  %v779_v15 = vld [vmem:[%s1353_s2 + $0x18] sm:$0xf0] }
  0x41   :  { %217 = vmatmul.bf16.gmra.mxu0 %v658_v48  ;;  %323 = vmatmul.bf16.gmra.mxu2 %v754_v50  ;;  %v782_v21 = vor.u32 %v865_v14, %v779_v15 }
  0x42   :  { %246 = vmatmul.bf16.gmra.mxu1 %v662_v49 }
  0x44   :  { %352 = vmatmul.bf16.gmra.mxu3 %v758_v51 }
  0x51   :  { %222 = vmatmul.bf16.gmra.mxu0 %v666_v60  ;;  %328 = vmatmul.bf16.gmra.mxu2 %v762_v62 }
  0x52   :  { %251 = vmatmul.bf16.gmra.mxu1 %v670_v61 }
  0x54   :  { %357 = vmatmul.bf16.gmra.mxu3 %v766_v63 }
  0x61   :  { %427 = vmatmul.bf16.vlgmr.msrb.gmra.mxu0 %v770_v8  ;;  %541 = vmatmul.bf16.vlgmr.msrb.gmra.mxu2 %v802_v10 }
  0x62   :  { %456 = vmatmul.bf16.vlgmr.msrb.gmra.mxu1 %v774_v9 }
  0x64   :  { %570 = vmatmul.bf16.vlgmr.msrb.gmra.mxu3 %v806_v11 }
  0x71   :  { %432 = vmatmul.bf16.gmra.mxu0 %v778_v20  ;;  %546 = vmatmul.bf16.gmra.mxu2 %v810_v22 }
  0x72   :  { %461 = vmatmul.bf16.gmra.mxu1 %v782_v21 }
  0x74   :  { %575 = vmatmul.bf16.gmra.mxu3 %v814_v23 }
  0x81   :  { %437 = vmatmul.bf16.gmra.mxu0 %v786_v32  ;;  %551 = vmatmul.bf16.gmra.mxu2 %v818_v34 }
  0x82   :  { %466 = vmatmul.bf16.gmra.mxu1 %v790_v33 }
  0x84   :  { %580 = vmatmul.bf16.gmra.mxu3 %v822_v35 }
  0x91   :  { %442 = vmatmul.bf16.gmra.mxu0 %v794_v44  ;;  %556 = vmatmul.bf16.gmra.mxu2 %v826_v46 }
  0x92   :  { %471 = vmatmul.bf16.gmra.mxu1 %v798_v45 }
  0x94   :  { %585 = vmatmul.bf16.gmra.mxu3 %v830_v47 }
  0x9e   :  { %v208_v48 = vpop.f32.mrf.mxu0 }
  0x9f   :  { %v237_v49 = vpop.f32.mrf.mxu1 }
  0xa0   :  { %v238_v50 = vadd.f32 %v237_v49, %v208_v48 }
  0xa4   :  { %v314_v51 = vpop.f32.mrf.mxu2 }
  0xa6   :  { %v210_v54 = vpop.f32.mrf.mxu0 }
  0xa7   :  { %v343_v52 = vpop.f32.mrf.mxu3  ;;  %v239_v55 = vpop.f32.mrf.mxu1 }
  0xa8   :  { %v344_v53 = vadd.f32 %v343_v52, %v314_v51  ;;  %v240_v37 = vadd.f32 %v239_v55, %v210_v54 }
  0xaa   :  { %v363_v56 = vmax.f32 %v238_v50, %v344_v53 }
  0xac   :  { %v316_v57 = vpop.f32.mrf.mxu2 }
  0xae   :  { %v213_v59 = vpop.f32.mrf.mxu0 }
  0xaf   :  { %v345_v58 = vpop.f32.mrf.mxu3  ;;  %v242_v60 = vpop.f32.mrf.mxu1 }
  0xb0   :  { %v1274_v61 = vadd.f32 %v242_v60, %v213_v59  ;;  %v346_v35 = vadd.f32 %v345_v58, %v316_v57 }
  0xb2   :  { %v364_v40 = vmax.f32 %v240_v37, %v346_v35 }
  0xb4   :  { %v319_v62 = vpop.f32.mrf.mxu2 }
  0xb6   :  { %v1278_v1 = vpop.f32.mrf.mxu0 }
  0xb7   :  { %v348_v63 = vpop.f32.mrf.mxu3  ;;  %v244_v2 = vpop.f32.mrf.mxu1 }
  0xb8   :  { %v1276_v0 = vadd.f32 %v348_v63, %v319_v62  ;;  %v245_v62 = vadd.f32 %v244_v2, %v1278_v1 }
  0xba   :  { %v365_v3 = vmax.f32 %v1274_v61, %v1276_v0 }
  0xbc   :  { %v321_v4 = vpop.f32.mrf.mxu2 }
  0xbe   :  { %v218_v6 = vpop.f32.mrf.mxu0 }
  0xbf   :  { %v350_v5 = vpop.f32.mrf.mxu3  ;;  %v247_v7 = vpop.f32.mrf.mxu1 }
  0xc0   :  { %v1282_v8 = vadd.f32 %v247_v7, %v218_v6  ;;  %v351_v60 = vadd.f32 %v350_v5, %v321_v4 }
  0xc2   :  { %v366_v6 = vmax.f32 %v245_v62, %v351_v60 }
  0xc4   :  { %v324_v9 = vpop.f32.mrf.mxu2 }
  0xc6   :  { %v1286_v12 = vpop.f32.mrf.mxu0 }
  0xc7   :  { %v353_v10 = vpop.f32.mrf.mxu3  ;;  %v1288_v13 = vpop.f32.mrf.mxu1 }
  0xc8   :  { %v1284_v11 = vadd.f32 %v353_v10, %v324_v9 }
  0xca   :  { %v367_v14 = vmax.f32 %v1282_v8, %v1284_v11 }
  0xcc   :  { %v1292_v15 = vpop.f32.mrf.mxu2 }
  0xce   :  { %v223_v17 = vpop.f32.mrf.mxu0 }
  0xcf   :  { %v1294_v16 = vpop.f32.mrf.mxu3  ;;  %v252_v18 = vpop.f32.mrf.mxu1 }
  0xd0   :  { %v1296_v19 = vadd.f32 %v252_v18, %v223_v17 }
  0xd4   :  { %v329_v20 = vpop.f32.mrf.mxu2 }
  0xd6   :  { %v1300_v23 = vpop.f32.mrf.mxu0 }
  0xd7   :  { %v358_v21 = vpop.f32.mrf.mxu3  ;;  %v1302_v24 = vpop.f32.mrf.mxu1 }
  0xd8   :  { %v1298_v22 = vadd.f32 %v358_v21, %v329_v20 }
  0xda   :  { %v369_v25 = vmax.f32 %v1296_v19, %v1298_v22 }
  0xdc   :  { %v1306_v26 = vpop.f32.mrf.mxu2 }
  0xde   :  { %v428_v28 = vpop.f32.mrf.mxu0 }
  0xdf   :  { %v1308_v27 = vpop.f32.mrf.mxu3  ;;  %v457_v29 = vpop.f32.mrf.mxu1 }
  0xe0   :  { %v458_v32 = vadd.f32 %v457_v29, %v428_v28 }
  0xe2   :  { %v477_v38 = vmax.f32 %v363_v56, %v458_v32 }
  0xe4   :  { %v542_v30 = vpop.f32.mrf.mxu2 }
  0xe6   :  { %v430_v33 = vpop.f32.mrf.mxu0 }
  0xe7   :  { %v571_v31 = vpop.f32.mrf.mxu3  ;;  %v459_v34 = vpop.f32.mrf.mxu1 }
  0xe8   :  { %v572_v36 = vadd.f32 %v571_v31, %v542_v30  ;;  %v460_v39 = vadd.f32 %v459_v34, %v430_v33  ;;  %v356_v34 = vadd.f32 %v1294_v16, %v1292_v15 }
  0xea   :  { %v591_v41 = vmax.f32 %v477_v38, %v572_v36  ;;  %v478_v45 = vmax.f32 %v364_v40, %v460_v39  ;;  %v250_v36 = vadd.f32 %v1288_v13, %v1286_v12 }
  0xec   :  { %v544_v43 = vpop.f32.mrf.mxu2  ;;  %v603_v49 = vadd.f32 %v1313_v42, %v591_v41  ;;  %v368_v39 = vmax.f32 %v250_v36, %v356_v34 }
  0xee   :  { %v433_v47 = vpop.f32.mrf.mxu0  ;;  %v611_v52 = vmax.f32 %v603_v49, 0.0 }
  0xef   :  { %v573_v44 = vpop.f32.mrf.mxu3  ;;  %v462_v48 = vpop.f32.mrf.mxu1 }
  0xf0   :  { %v574_v46 = vadd.f32 %v573_v44, %v544_v43  ;;  %v463_v57 = vadd.f32 %v462_v48, %v433_v47 }
  0xf2   :  { %v592_v50 = vmax.f32 %v478_v45, %v574_v46  ;;  %v479_v63 = vmax.f32 %v365_v3, %v463_v57 }
  0xf4   :  { %v604_v51 = vadd.f32 %v1313_v42, %v592_v50  ;;  %v547_v54 = vpop.f32.mrf.mxu2 }
  0xf6   :  { %v612_v53 = vmax.f32 %v604_v51, 0.0  ;;  %v435_v58 = vpop.f32.mrf.mxu0 }
  0xf7   :  { %v576_v55 = vpop.f32.mrf.mxu3  ;;  %v464_v59 = vpop.f32.mrf.mxu1 }
  0xf8   :  { %v882_v56 = vpack.c.bf16 %v612_v53, %v611_v52  ;;  %v577_v61 = vadd.f32 %v576_v55, %v547_v54  ;;  %v465_v0 = vadd.f32 %v464_v59, %v435_v58  ;;  %v361_v52 = vadd.f32 %v1308_v27, %v1306_v26 }
  0xf9   :  { %v255_v54 = vadd.f32 %v1302_v24, %v1300_v23 }
  0xfa   :  { %883 = vst [vmem:[%s1356_s6] sm:$0xff] %v882_v56   ;;  %v593_v7 = vmax.f32 %v479_v63, %v577_v61  ;;  %v480_v17 = vmax.f32 %v366_v6, %v465_v0 }
  0xfb   :  { %v370_v57 = vmax.f32 %v255_v54, %v361_v52 }
  0xfc   :  { %v549_v9 = vpop.f32.mrf.mxu2  ;;  %v605_v28 = vadd.f32 %v1313_v42, %v593_v7 }
  0xfe   :  { %v438_v20 = vpop.f32.mrf.mxu0  ;;  %v613_v29 = vmax.f32 %v605_v28, 0.0 }
  0xff   :  { %v578_v10 = vpop.f32.mrf.mxu3  ;;  %v467_v21 = vpop.f32.mrf.mxu1 }
 0x100   :  { %v579_v18 = vadd.f32 %v578_v10, %v549_v9  ;;  %v468_v2 = vadd.f32 %v467_v21, %v438_v20 }
 0x102   :  { %v594_v4 = vmax.f32 %v480_v17, %v579_v18  ;;  %v481_v37 = vmax.f32 %v367_v14, %v468_v2 }
 0x104   :  { %v606_v5 = vadd.f32 %v1313_v42, %v594_v4  ;;  %v552_v31 = vpop.f32.mrf.mxu2 }
 0x106   :  { %v614_v30 = vmax.f32 %v606_v5, 0.0  ;;  %v440_v3 = vpop.f32.mrf.mxu0 }
 0x107   :  { %v581_v32 = vpop.f32.mrf.mxu3  ;;  %v469_v33 = vpop.f32.mrf.mxu1 }
 0x108   :  { %v887_v1 = vpack.c.bf16 %v614_v30, %v613_v29  ;;  %v582_v35 = vadd.f32 %v581_v32, %v552_v31  ;;  %v470_v38 = vadd.f32 %v469_v33, %v440_v3 }
 0x10a   :  { %899 = vst [vmem:[%s1356_s6 + $0x8] sm:$0xff] %v887_v1   ;;  %v595_v40 = vmax.f32 %v481_v37, %v582_v35  ;;  %v482_v44 = vmax.f32 %v368_v39, %v470_v38 }
 0x10c   :  { %v554_v41 = vpop.f32.mrf.mxu2  ;;  %v607_v46 = vadd.f32 %v1313_v42, %v595_v40 }
 0x10e   :  { %v443_v15 = vpop.f32.mrf.mxu0  ;;  %v615_v49 = vmax.f32 %v607_v46, 0.0 }
 0x10f   :  { %v583_v43 = vpop.f32.mrf.mxu3  ;;  %v472_v16 = vpop.f32.mrf.mxu1 }
 0x110   :  { %v584_v45 = vadd.f32 %v583_v43, %v554_v41  ;;  %v473_v11 = vadd.f32 %v472_v16, %v443_v15 }
 0x112   :  { %v596_v47 = vmax.f32 %v482_v44, %v584_v45  ;;  %v483_v55 = vmax.f32 %v369_v25, %v473_v11 }
 0x114   :  { %v608_v48 = vadd.f32 %v1313_v42, %v596_v47  ;;  %v557_v13 = vpop.f32.mrf.mxu2 }
 0x116   :  { %v616_v12 = vmax.f32 %v608_v48, 0.0  ;;  %v445_v14 = vpop.f32.mrf.mxu0 }
 0x117   :  { %v586_v50 = vpop.f32.mrf.mxu3  ;;  %v474_v51 = vpop.f32.mrf.mxu1 }
 0x118   :  { %v892_v8 = vpack.c.bf16 %v616_v12, %v615_v49  ;;  %v587_v53 = vadd.f32 %v586_v50, %v557_v13  ;;  %v475_v56 = vadd.f32 %v474_v51, %v445_v14 }
 0x11a   :  { %900 = vst [vmem:[%s1356_s6 + $0x10] sm:$0xff] %v892_v8   ;;  %v597_v58 = vmax.f32 %v483_v55, %v587_v53  ;;  %v484_v61 = vmax.f32 %v370_v57, %v475_v56 }
 0x11c   :  { %v559_v59 = vpop.f32.mrf.mxu2  ;;  %v609_v26 = vadd.f32 %v1313_v42, %v597_v58 }
 0x11e   :  { %v617_v0 = vmax.f32 %v609_v26, 0.0 }
 0x11f   :  { %v588_v60 = vpop.f32.mrf.mxu3 }
 0x120   :  { %v589_v62 = vadd.f32 %v588_v60, %v559_v59 }
 0x122   :  { %v598_v27 = vmax.f32 %v484_v61, %v589_v62 }
 0x124   :  { %v610_v63 = vadd.f32 %v1313_v42, %v598_v27 }
 0x126   :  { %v618_v6 = vmax.f32 %v610_v63, 0.0 }
 0x128   :  { %v897_v7 = vpack.c.bf16 %v618_v6, %v617_v0 }
 0x12a   :  { %901 = vst [vmem:[%s1356_s6 + $0x18] sm:$0xff] %v897_v7  }

// kernel: forward.5
= control target key start
LH: loop header
LB: loop body
LE: loop exit
PB: predicated region body
PF: predicated region fallthrough
CT: control target
= control target key end

     0   :  { %s1028_s1 = inlined_call_operand.vmem [shape: bf16[512,128], index: 1, kind: input, shape index: {}]   ;;  %s1029_s2 = inlined_call_operand.vmem [shape: f32[1,128], index: 2, kind: input, shape index: {}]   ;;  %s1030_s0 = inlined_call_operand.vmem [shape: bf16[16,512], index: 0, kind: input, shape index: {}]   ;;  %s1031_s3 = inlined_call_operand.vmem [shape: bf16[128,128], index: 3, kind: input, shape index: {}]   ;;  %s1032_s4 = inlined_call_operand.vmem [shape: f32[1,128], index: 4, kind: input, shape index: {}]   ;;  %s1033_s5 = inlined_call_operand.vmem [shape: bf16[128,128], index: 5, kind: input, shape index: {}]   ;;  %s1034_s6 = inlined_call_operand.vmem [shape: f32[1,128], index: 6, kind: input, shape index: {}]   ;;  %s1035_s7 = inlined_call_operand.vmem [shape: f32[16,128], index: 7, kind: output, shape index: {}]  }
   0x1   :  { %v761_v0 = vld [vmem:[%s1028_s1 + $0x38] sm:$0xff]  ;;  %v760_v4 = vld [vmem:[%s1028_s1 + $0x30] sm:$0xff]  ;;  %v759_v8 = vld [vmem:[%s1028_s1 + $0x28] sm:$0xff] }
   0x2   :  { %v769_v1 = vld [vmem:[%s1028_s1 + $0x78] sm:$0xff]  ;;  %310 = vmatpush.bf16.msra.mxu0 %v761_v0  ;;  %v768_v5 = vld [vmem:[%s1028_s1 + $0x70] sm:$0xff]  ;;  %v767_v9 = vld [vmem:[%s1028_s1 + $0x68] sm:$0xff] }
   0x3   :  { %v777_v2 = vld [vmem:[%s1028_s1 + $0xb8] sm:$0xff]  ;;  %324 = vmatpush.bf16.msra.mxu1 %v769_v1  ;;  %v776_v6 = vld [vmem:[%s1028_s1 + $0xb0] sm:$0xff]  ;;  %v775_v10 = vld [vmem:[%s1028_s1 + $0xa8] sm:$0xff] }
   0x4   :  { %v785_v3 = vld [vmem:[%s1028_s1 + $0xf8] sm:$0xff]  ;;  %338 = vmatpush.bf16.msra.mxu2 %v777_v2  ;;  %v784_v7 = vld [vmem:[%s1028_s1 + $0xf0] sm:$0xff]  ;;  %v783_v11 = vld [vmem:[%s1028_s1 + $0xe8] sm:$0xff] }
   0x5   :  { %352 = vmatpush.bf16.msra.mxu3 %v785_v3  ;;  %v758_v12 = vld [vmem:[%s1028_s1 + $0x20] sm:$0xff]  ;;  %v757_v16 = vld [vmem:[%s1028_s1 + $0x18] sm:$0xff]  ;;  %v756_v20 = vld [vmem:[%s1028_s1 + $0x10] sm:$0xff] }
   0x6   :  { %311 = vmatpush.bf16.msra.mxu0 %v760_v4  ;;  %v766_v13 = vld [vmem:[%s1028_s1 + $0x60] sm:$0xff]  ;;  %v765_v17 = vld [vmem:[%s1028_s1 + $0x58] sm:$0xff]  ;;  %v764_v21 = vld [vmem:[%s1028_s1 + $0x50] sm:$0xff] }
   0x7   :  { %325 = vmatpush.bf16.msra.mxu1 %v768_v5  ;;  %v774_v14 = vld [vmem:[%s1028_s1 + $0xa0] sm:$0xff]  ;;  %v773_v18 = vld [vmem:[%s1028_s1 + $0x98] sm:$0xff]  ;;  %v772_v22 = vld [vmem:[%s1028_s1 + $0x90] sm:$0xff] }
   0x8   :  { %339 = vmatpush.bf16.msra.mxu2 %v776_v6  ;;  %v782_v15 = vld [vmem:[%s1028_s1 + $0xe0] sm:$0xff]  ;;  %v781_v19 = vld [vmem:[%s1028_s1 + $0xd8] sm:$0xff]  ;;  %v780_v23 = vld [vmem:[%s1028_s1 + $0xd0] sm:$0xff] }
   0x9   :  { %353 = vmatpush.bf16.msra.mxu3 %v784_v7  ;;  %v755_v24 = vld [vmem:[%s1028_s1 + $0x8] sm:$0xff]  ;;  %v754_v28 = vld [vmem:[%s1028_s1] sm:$0xff]  ;;  %v752_v33 = vld [vmem:[%s1030_s0 + $0xc] sm:$0xf0] }
   0xa   :  { %312 = vmatpush.bf16.msra.mxu0 %v759_v8  ;;  %v763_v25 = vld [vmem:[%s1028_s1 + $0x48] sm:$0xff]  ;;  %v762_v29 = vld [vmem:[%s1028_s1 + $0x40] sm:$0xff]  ;;  %v546_v35 = vld [vmem:[%s1030_s0 + $0x10] sm:$0xf0] }
   0xb   :  { %326 = vmatpush.bf16.msra.mxu1 %v767_v9  ;;  %v771_v26 = vld [vmem:[%s1028_s1 + $0x88] sm:$0xff]  ;;  %v770_v30 = vld [vmem:[%s1028_s1 + $0x80] sm:$0xff]  ;;  %v753_v37 = vld [vmem:[%s1030_s0 + $0x14] sm:$0xf0] }
   0xc   :  { %340 = vmatpush.bf16.msra.mxu2 %v775_v10  ;;  %v779_v27 = vld [vmem:[%s1028_s1 + $0xc8] sm:$0xff]  ;;  %v778_v31 = vld [vmem:[%s1028_s1 + $0xc0] sm:$0xff]  ;;  %v554_v39 = vld [vmem:[%s1030_s0 + $0x18] sm:$0xf0] }
   0xd   :  { %354 = vmatpush.bf16.msra.mxu3 %v783_v11  ;;  %v544_v32 = vld [vmem:[%s1030_s0] sm:$0xf]  ;;  %v750_v34 = vld [vmem:[%s1030_s0 + $0x4] sm:$0xf]  ;;  %v552_v36 = vld [vmem:[%s1030_s0 + $0x8] sm:$0xf] }
   0xe   :  { %313 = vmatpush.bf16.msra.mxu0 %v758_v12  ;;  %v751_v38 = vld [vmem:[%s1030_s0 + $0xc] sm:$0xf]  ;;  %v793_v40 = vld [vmem:[%s1031_s3 + $0x38] sm:$0xff]  ;;  %v545_v41 = vor.u32 %v752_v33, %v544_v32  ;;  %v549_v42 = vor.u32 %v750_v34, %v546_v35  ;;  %v553_v43 = vor.u32 %v753_v37, %v552_v36  ;;  %v792_v45 = vld [vmem:[%s1031_s3 + $0x30] sm:$0xff] }
   0xf   :  { %327 = vmatpush.bf16.msra.mxu1 %v766_v13  ;;  %v557_v44 = vor.u32 %v751_v38, %v554_v39  ;;  %v791_v46 = vld [vmem:[%s1031_s3 + $0x28] sm:$0xff]  ;;  %v790_v47 = vld [vmem:[%s1031_s3 + $0x20] sm:$0xff]  ;;  %v789_v48 = vld [vmem:[%s1031_s3 + $0x18] sm:$0xff] }
  0x10   :  { %341 = vmatpush.bf16.msra.mxu2 %v774_v14  ;;  %v788_v49 = vld [vmem:[%s1031_s3 + $0x10] sm:$0xff]  ;;  %v787_v50 = vld [vmem:[%s1031_s3 + $0x8] sm:$0xff]  ;;  %v786_v51 = vld [vmem:[%s1031_s3] sm:$0xff] }
  0x11   :  { %355 = vmatpush.bf16.msra.mxu3 %v782_v15  ;;  %v801_v52 = vld [vmem:[%s1033_s5 + $0x38] sm:$0xff]  ;;  %v800_v53 = vld [vmem:[%s1033_s5 + $0x30] sm:$0xff]  ;;  %v799_v54 = vld [vmem:[%s1033_s5 + $0x28] sm:$0xff] }
  0x12   :  { %314 = vmatpush.bf16.msra.mxu0 %v757_v16  ;;  %v802_v55 = vld [vmem:[%s1029_s2] ss:$0 sm:$0xff]  ;;  %v797_v12 = vld [vmem:[%s1033_s5 + $0x18] sm:$0xff]  ;;  %v796_v13 = vld [vmem:[%s1033_s5 + $0x10] sm:$0xff] }
  0x13   :  { %328 = vmatpush.bf16.msra.mxu1 %v765_v17  ;;  %v798_v57 = vld [vmem:[%s1033_s5 + $0x20] sm:$0xff]  ;;  %v795_v14 = vld [vmem:[%s1033_s5 + $0x8] sm:$0xff] }
  0x14   :  { %342 = vmatpush.bf16.msra.mxu2 %v773_v18  ;;  %v794_v15 = vld [vmem:[%s1033_s5] sm:$0xff] }
  0x15   :  { %356 = vmatpush.bf16.msra.mxu3 %v781_v19  ;;  %v803_v17 = vld [vmem:[%s1032_s4] ss:$0 sm:$0xff] }
  0x16   :  { %315 = vmatpush.bf16.msra.mxu0 %v756_v20 }
  0x17   :  { %329 = vmatpush.bf16.msra.mxu1 %v764_v21 }
  0x18   :  { %343 = vmatpush.bf16.msra.mxu2 %v772_v22 }
  0x19   :  { %357 = vmatpush.bf16.msra.mxu3 %v780_v23 }
  0x1a   :  { %316 = vmatpush.bf16.msra.mxu0 %v755_v24  ;;  %v804_v24 = vld [vmem:[%s1034_s6] ss:$0 sm:$0xff] }
  0x1b   :  { %330 = vmatpush.bf16.msra.mxu1 %v763_v25 }
  0x1c   :  { %344 = vmatpush.bf16.msra.mxu2 %v771_v26 }
  0x1d   :  { %358 = vmatpush.bf16.msra.mxu3 %v779_v27 }
  0x1e   :  { %317 = vmatpush.bf16.msra.mxu0 %v754_v28 }
  0x1f   :  { %331 = vmatpush.bf16.msra.mxu1 %v762_v29 }
  0x20   :  { %345 = vmatpush.bf16.msra.mxu2 %v770_v30 }
  0x21   :  { %359 = vmatpush.bf16.msra.mxu3 %v778_v31  ;;  %318 = vmatmul.bf16.vlgmr.msra.gmra.mxu0 %v545_v41 }
  0x22   :  { %437 = vmatpush.bf16.msrb.mxu0 %v793_v40  ;;  %332 = vmatmul.bf16.vlgmr.msra.gmra.mxu1 %v549_v42 }
  0x23   :  { %346 = vmatmul.bf16.vlgmr.msra.gmra.mxu2 %v553_v43  ;;  %522 = vmatpush.bf16.msrb.mxu1 %v801_v52 }
  0x24   :  { %360 = vmatmul.bf16.vlgmr.msra.gmra.mxu3 %v557_v44 }
  0x26   :  { %438 = vmatpush.bf16.msrb.mxu0 %v792_v45 }
  0x27   :  { %523 = vmatpush.bf16.msrb.mxu1 %v800_v53 }
  0x2a   :  { %439 = vmatpush.bf16.msrb.mxu0 %v791_v46 }
  0x2b   :  { %524 = vmatpush.bf16.msrb.mxu1 %v799_v54 }
  0x2e   :  { %440 = vmatpush.bf16.msrb.mxu0 %v790_v47 }
  0x2f   :  { %525 = vmatpush.bf16.msrb.mxu1 %v798_v57 }
  0x32   :  { %441 = vmatpush.bf16.msrb.mxu0 %v789_v48 }
  0x33   :  { %526 = vmatpush.bf16.msrb.mxu1 %v797_v12 }
  0x36   :  { %442 = vmatpush.bf16.msrb.mxu0 %v788_v49 }
  0x37   :  { %527 = vmatpush.bf16.msrb.mxu1 %v796_v13 }
  0x3a   :  { %443 = vmatpush.bf16.msrb.mxu0 %v787_v50 }
  0x3b   :  { %528 = vmatpush.bf16.msrb.mxu1 %v795_v14 }
  0x3e   :  { %444 = vmatpush.bf16.msrb.mxu0 %v786_v51 }
  0x3f   :  { %529 = vmatpush.bf16.msrb.mxu1 %v794_v15 }
  0x9e   :  { %v319_v56 = vpop.f32.mrf.mxu0 }
  0x9f   :  { %v333_v58 = vpop.f32.mrf.mxu1  ;;  %v320_v59 = vadd.f32 %v802_v55, %v319_v56 }
  0xa1   :  { %v334_v62 = vadd.f32 %v333_v58, %v320_v59 }
  0xa6   :  { %v347_v60 = vpop.f32.mrf.mxu2  ;;  %v321_v63 = vpop.f32.mrf.mxu0 }
  0xa7   :  { %v361_v61 = vpop.f32.mrf.mxu3  ;;  %v322_v0 = vadd.f32 %v802_v55, %v321_v63  ;;  %v348_v1 = vadd.f32 %v347_v60, %v334_v62  ;;  %v335_v2 = vpop.f32.mrf.mxu1 }
  0xa9   :  { %v336_v3 = vadd.f32 %v335_v2, %v322_v0  ;;  %v362_v5 = vadd.f32 %v361_v61, %v348_v1 }
  0xab   :  { %v366_v9 = vmax.f32 %v362_v5, 0.0 }
  0xae   :  { %v349_v4 = vpop.f32.mrf.mxu2 }
  0xaf   :  { %v350_v6 = vadd.f32 %v349_v4, %v336_v3  ;;  %v363_v7 = vpop.f32.mrf.mxu3 }
  0xb1   :  { %v364_v8 = vadd.f32 %v363_v7, %v350_v6 }
  0xb3   :  { %v367_v10 = vmax.f32 %v364_v8, 0.0 }
  0xb5   :  { %v368_v11 = vpack.c.bf16 %v367_v10, %v366_v9 }
  0xb7   :  { %445 = vmatmul.bf16.vlgmr.msrb.gmra.mxu0 %v368_v11 }
 0x134   :  { %v446_v16 = vpop.f32.mrf.mxu0 }
 0x135   :  { %v447_v18 = vadd.f32 %v803_v17, %v446_v16 }
 0x137   :  { %v451_v21 = vmax.f32 %v447_v18, 0.0 }
 0x13c   :  { %v448_v19 = vpop.f32.mrf.mxu0 }
 0x13d   :  { %v449_v20 = vadd.f32 %v803_v17, %v448_v19 }
 0x13f   :  { %v452_v22 = vmax.f32 %v449_v20, 0.0 }
 0x141   :  { %v453_v23 = vpack.c.bf16 %v452_v22, %v451_v21 }
 0x143   :  { %530 = vmatmul.bf16.vlgmr.msrb.gmra.mxu1 %v453_v23 }
 0x1c0   :  { %v531_v25 = vpop.f32.mrf.mxu1 }
 0x1c1   :  { %v532_v26 = vadd.f32 %v804_v24, %v531_v25 }
 0x1c3   :  { %536 = vst [vmem:[%s1035_s7] sm:$0xff] %v532_v26 }
 0x1c8   :  { %v533_v27 = vpop.f32.mrf.mxu1 }
 0x1c9   :  { %v534_v28 = vadd.f32 %v804_v24, %v533_v27 }
 0x1cb   :  { %537 = vst [vmem:[%s1035_s7 + $0x8] sm:$0xff] %v534_v28 }

</bundles_post_ra>
